<compile_context>
chip_gen: v7x
topology: tpu7x:2x2x1
jax: 0.10.0
libtpu: 0.0.40
codegen_flags: <defaults>
</compile_context>

<pallas_src>
import numpy as np
import jax
import jax.numpy as jnp
from jax.experimental import pallas as pl
from jax.experimental.pallas import tpu as pltpu


# ----------------------------------------------------------------- architecture config
# (K, Cin, Cout, dilation, relu) per layer of the CSRNet-like stand-in.
_LAYERS = (
    (3, 3, 8, 1, True),     # frontend
    (3, 8, 8, 1, True),     # 2x2 maxpool follows this layer
    (3, 8, 16, 1, True),
    (3, 16, 16, 2, True),   # dilated backend (CSRNet signature)
    (3, 16, 8, 2, True),
    (1, 8, 1, 1, False),    # 1x1 density-map head
)
_COUT = tuple(l[2] for l in _LAYERS)
_KKC = tuple(l[0] * l[0] * l[1] for l in _LAYERS)            # exact contraction lengths
_ROFF = tuple(int(v) for v in np.cumsum((0,) + _COUT[:-1]))  # (0, 8, 16, 32, 48, 56)
_WROWS, _WCOLS = 64, max(_KKC)                               # packed weight container

# ----------------------------------------------------------------- flat-padded geometry
_H1 = _W1 = 16
_P1 = _H1 + 2                  # padded width, stage 1 (pad 1)      -> 18
_L1 = _P1 * _P1                # flat padded length                 -> 324
_M1 = (_H1 - 1) * _P1 + _W1    # last valid flat output index + 1   -> 286

_H2 = _W2 = 8
_P2 = _H2 + 2                  # 10 (pad 1)
_L2 = _P2 * _P2                # 100
_M2 = (_H2 - 1) * _P2 + _W2    # 78

_P3 = _H2 + 4                  # 12 (pad 2, dilation 2)
_L3 = _P3 * _P3                # 144
_M3 = (_H2 - 1) * _P3 + _W2    # 92

_MP = (2 * (_H2 - 1)) * _P1 + 2 * (_W2 - 1) + 1   # 267 : pool pre-decimation extent


# ----------------------------------------------------------------- constant 0/1 matrices
def _regeom(h, w, wp_src, pad_dst):
    """Valid source col j=y*wp_src+x -> dest flat (y+p)*(w+2p)+(x+p); halo cols are 0."""
    wd = w + 2 * pad_dst
    hd = h + 2 * pad_dst
    m = (h - 1) * wp_src + w
    g = np.zeros((m, hd * wd), np.float32)
    for y in range(h):
        for x in range(w):
            g[y * wp_src + x, (y + pad_dst) * wd + (x + pad_dst)] = 1.0
    return g


def _pool_regeom():
    """Pooled-max col (2i)*18+(2j) -> layer-3 padded flat (i+1)*10+(j+1)."""
    g = np.zeros((_MP, _L2), np.float32)
    for i in range(_H2):
        for j in range(_W2):
            g[(2 * i) * _P1 + 2 * j, (i + 1) * _P2 + (j + 1)] = 1.0
    return g


_G1 = _regeom(_H1, _W1, _P1, 1)   # (286, 324) layer1 out -> layer2 padded in
_GP = _pool_regeom()              # (267, 100) pool out   -> layer3 padded in
_G3 = _regeom(_H2, _W2, _P2, 2)   # ( 78, 144) layer3 out -> layer4 padded in
_G4 = _regeom(_H2, _W2, _P3, 2)   # ( 92, 144) layer4 out -> layer5 padded in
_G5 = _regeom(_H2, _W2, _P3, 0)   # ( 92,  64) layer5 out -> dense 8x8


# ------------------------------------------------------------------------------- kernel
def _csrnet_fused_kernel(x_ref, w_ref, b_ref, g1_ref, gp_ref, g3_ref, g4_ref, g5_ref,
                         o_ref, pad0, padA, padB, padC, padD, ybuf, col):
    """Fused CSRNet-like forward for B images (lane-dense, channel-on-sublane layout).

    x_ref : (B, 3, 324)   pre-padded flat images
    w_ref : (64, 144)     packed im2col weights, layer l at rows [_ROFF[l], +Cout)
    b_ref : (64, 1)       packed biases
    g*_ref: 0/1 scatter/decimation matrices (see module constants)
    o_ref : (B, 1, 64)    density map, flat 8x8 on lanes
    Scratch: per-image flat padded activations + shared im2col buffer (all f32 VMEM).
    """
    f32 = jnp.float32

    def conv(src, li, cin, wp, dil, m):
        """3x3 'same' conv in flat-padded layout -> (Cout, m) f32, bias + ReLU."""
        roff, cout, kkc = _ROFF[li], _COUT[li], _KKC[li]
        for dy in range(3):
            for dx in range(3):
                off = (dy * wp + dx) * dil
                col[pl.ds((dy * 3 + dx) * cin, cin), pl.ds(0, m)] = src[:, pl.ds(off, m)]
        w = w_ref[pl.ds(roff, cout), pl.ds(0, kkc)]
        y = jnp.dot(w, col[pl.ds(0, kkc), pl.ds(0, m)], preferred_element_type=f32)
        y = y + b_ref[pl.ds(roff, cout), :]
        return jnp.maximum(y, 0.0)

    nb = x_ref.shape[0]                     # images per grid step (static)
    for b in range(nb):
        pad0[...] = x_ref[b]                                               # (3, 324)

        # frontend ------------------------------------------------------------------
        y = conv(pad0, 0, 3, _P1, 1, _M1)                                  # (8, 286)
        padA[...] = jnp.dot(y, g1_ref[...], preferred_element_type=f32)    # (8, 324)
        ybuf[...] = conv(padA, 1, 8, _P1, 1, _M1)                          # (8, 286)

        # 2x2 maxpool: shifted-slice maxes, then decimate + repad in one matmul.
        m = jnp.maximum(
            jnp.maximum(ybuf[:, pl.ds(0, _MP)], ybuf[:, pl.ds(1, _MP)]),
            jnp.maximum(ybuf[:, pl.ds(_P1, _MP)], ybuf[:, pl.ds(_P1 + 1, _MP)]))
        padB[...] = jnp.dot(m, gp_ref[...], preferred_element_type=f32)    # (8, 100)

        y = conv(padB, 2, 8, _P2, 1, _M2)                                  # (16, 78)
        padC[...] = jnp.dot(y, g3_ref[...], preferred_element_type=f32)    # (16, 144)

        # dilated backend -------------------------------------------------------------
        y = conv(padC, 3, 16, _P3, 2, _M3)                                 # (16, 92)
        padD[...] = jnp.dot(y, g4_ref[...], preferred_element_type=f32)    # (16, 144)
        y = conv(padD, 4, 16, _P3, 2, _M3)                                 # (8, 92)

        # 1x1 density head (no ReLU) ---------------------------------------------------
        yd = jnp.dot(y, g5_ref[...], preferred_element_type=f32)           # (8, 64)
        w6 = w_ref[pl.ds(_ROFF[5], 1), pl.ds(0, _KKC[5])]                  # (1, 8)
        out = jnp.dot(w6, yd, preferred_element_type=f32) + b_ref[pl.ds(_ROFF[5], 1), :]
        o_ref[pl.ds(b, 1), :, :] = out.reshape(1, 1, _H2 * _W2)            # (1, 1, 64)


# ------------------------------------------------------------------------------ wrapper
def _pick_block_batch(n):
    """Largest B<=8 dividing N that keeps >=2 grid steps (v7x has 2 TensorCores)."""
    best = 1
    for b in range(1, min(n, 8) + 1):
        if n % b == 0 and n // b >= 2:
            best = b
    return best


@jax.jit
def feature_extractor_forward(params, x_nchw):
    """FeatureExtractor.forward: x = self.csrnet(x). NCHW in -> NCHW density map out."""
    n = x_nchw.shape[0]
    bsz = _pick_block_batch(n)

    # Lane-dense input: zero-pad spatially (pad=1) and flatten -> (N, 3, 324).
    xp = jnp.pad(x_nchw.astype(jnp.float32), ((0, 0), (0, 0), (1, 1), (1, 1)))
    xflat = xp.reshape(n, 3, _L1)

    # Pack all weights/biases into one (64, 144) / (64, 1) pair, (tap, cin) im2col order.
    rows = []
    for i, (k, cin, cout, _, _) in enumerate(_LAYERS, 1):
        wm = params[f"w{i}"].reshape(k * k * cin, cout).T            # (cout, K*K*Cin)
        rows.append(jnp.pad(wm, ((0, 0), (0, _WCOLS - k * k * cin))))
    wpack = jnp.pad(jnp.concatenate(rows, axis=0), ((0, _WROWS - sum(_COUT)), (0, 0)))
    bvec = jnp.concatenate([params[f"b{i}"] for i in range(1, len(_LAYERS) + 1)])
    bpack = jnp.pad(bvec, (0, _WROWS - bvec.shape[0])).reshape(_WROWS, 1)

    def const(shape):
        return pl.BlockSpec(shape, lambda i: (0, 0))

    out = pl.pallas_call(
        _csrnet_fused_kernel,
        out_shape=jax.ShapeDtypeStruct((n, 1, _H2 * _W2), jnp.float32),
        grid=(n // bsz,),
        in_specs=[
            pl.BlockSpec((bsz, 3, _L1), lambda i: (i, 0, 0)),
            const((_WROWS, _WCOLS)),
            const((_WROWS, 1)),
            const(_G1.shape),
            const(_GP.shape),
            const(_G3.shape),
            const(_G4.shape),
            const(_G5.shape),
        ],
        out_specs=pl.BlockSpec((bsz, 1, _H2 * _W2), lambda i: (i, 0, 0)),
        scratch_shapes=[
            pltpu.VMEM((3, _L1), jnp.float32),           # pad0: layer-1 padded input
            pltpu.VMEM((8, _L1), jnp.float32),           # padA: layer-2 padded input
            pltpu.VMEM((8, _L2), jnp.float32),           # padB: layer-3 padded input
            pltpu.VMEM((16, _L3), jnp.float32),          # padC: layer-4 padded input
            pltpu.VMEM((16, _L3), jnp.float32),          # padD: layer-5 padded input
            pltpu.VMEM((8, _M1), jnp.float32),           # ybuf: layer-2 out (pool src)
            pltpu.VMEM((max(_KKC), _M1), jnp.float32),   # col : shared im2col buffer
        ],
        compiler_params=pltpu.CompilerParams(dimension_semantics=("parallel",)),
    )(xflat, wpack, bpack,
      jnp.asarray(_G1), jnp.asarray(_GP), jnp.asarray(_G3), jnp.asarray(_G4),
      jnp.asarray(_G5))
    return out.reshape(n, 1, _H2, _W2)


# ------------------------------------------------------------------------------- params
def init_params(key):
    params = {}
    keys = jax.random.split(key, len(_LAYERS))
    for i, ((k, cin, cout, _, _), kk) in enumerate(zip(_LAYERS, keys), 1):
        fan_in = k * k * cin
        params[f"w{i}"] = (jax.random.normal(kk, (k, k, cin, cout), jnp.float32)
                           / np.sqrt(fan_in))
        params[f"b{i}"] = jnp.full((cout,), 0.01, jnp.float32)
    return params


# ---------------------------------------------------------------------------- reference
def _conv_ref(x, w, b, dil, relu):
    pad = (w.shape[0] // 2) * dil
    y = jax.lax.conv_general_dilated(
        x, w, window_strides=(1, 1), padding=[(pad, pad), (pad, pad)],
        rhs_dilation=(dil, dil), dimension_numbers=("NHWC", "HWIO", "NHWC")) + b
    return jnp.maximum(y, 0.0) if relu else y


def _forward_ref(params, x_nchw):
    x = jnp.transpose(x_nchw, (0, 2, 3, 1)).astype(jnp.float32)
    for i, (_, _, _, dil, relu) in enumerate(_LAYERS, 1):
        x = _conv_ref(x, params[f"w{i}"], params[f"b{i}"], dil, relu)
        if i == 2:
            x = jax.lax.reduce_window(x, -jnp.inf, jax.lax.max,
                                      (1, 2, 2, 1), (1, 2, 2, 1), "VALID")
    return jnp.transpose(x, (0, 3, 1, 2))


# --------------------------------------------------------------------------------- main
if __name__ == "__main__":
    key = jax.random.PRNGKey(0)
    kx, kp = jax.random.split(key)

    params = init_params(kp)

    # PyTorch-style NCHW input: batch=2, RGB, 16x16 spatial (2 grid steps -> both v7x TCs).
    x = jax.random.normal(kx, (2, 3, 16, 16), jnp.float32)
    y = jax.block_until_ready(feature_extractor_forward(params, x))
    y_ref = jax.block_until_ready(_forward_ref(params, x))
    np.testing.assert_allclose(np.asarray(y), np.asarray(y_ref), rtol=5e-4, atol=5e-4)
    assert y.shape == (2, 1, 8, 8), y.shape

    # Also exercise the batched path (2 images per grid step).
    x4 = jax.random.normal(jax.random.fold_in(kx, 1), (4, 3, 16, 16), jnp.float32)
    y4 = jax.block_until_ready(feature_extractor_forward(params, x4))
    y4_ref = jax.block_until_ready(_forward_ref(params, x4))
    np.testing.assert_allclose(np.asarray(y4), np.asarray(y4_ref), rtol=5e-4, atol=5e-4)

    print("KERNEL_OK")
</pallas_src>

<mosaic_0001>
module attributes {stable_mosaic.version = 11 : i64} {
  func.func @_csrnet_fused_kernel(%arg0: i32, %arg1: memref<1x3x324xf32, #tpu.memory_space<vmem>>, %arg2: memref<64x144xf32, #tpu.memory_space<vmem>>, %arg3: memref<64x1xf32, #tpu.memory_space<vmem>>, %arg4: memref<286x324xf32, #tpu.memory_space<vmem>>, %arg5: memref<267x100xf32, #tpu.memory_space<vmem>>, %arg6: memref<78x144xf32, #tpu.memory_space<vmem>>, %arg7: memref<92x144xf32, #tpu.memory_space<vmem>>, %arg8: memref<92x64xf32, #tpu.memory_space<vmem>>, %arg9: memref<1x1x64xf32, #tpu.memory_space<vmem>>, %arg10: memref<3x324xf32, #tpu.memory_space<vmem>>, %arg11: memref<8x324xf32, #tpu.memory_space<vmem>>, %arg12: memref<8x100xf32, #tpu.memory_space<vmem>>, %arg13: memref<16x144xf32, #tpu.memory_space<vmem>>, %arg14: memref<16x144xf32, #tpu.memory_space<vmem>>, %arg15: memref<8x286xf32, #tpu.memory_space<vmem>>, %arg16: memref<144x286xf32, #tpu.memory_space<vmem>>) attributes {dimension_semantics = [#tpu.dimension_semantics<parallel>], iteration_bounds = array<i64: 2>, scalar_prefetch = 0 : i64, scratch_operands = 7 : i64, tpu.core_type = #tpu.core_type<tc>, window_params = [{transform_indices = @transform_0, window_bounds = array<i64: 1, 3, 324>}, {pipeline_mode = #tpu.pipeline_mode<synchronous>, transform_indices = @transform_1, window_bounds = array<i64: 64, 144>}, {pipeline_mode = #tpu.pipeline_mode<synchronous>, transform_indices = @transform_2, window_bounds = array<i64: 64, 1>}, {pipeline_mode = #tpu.pipeline_mode<synchronous>, transform_indices = @transform_3, window_bounds = array<i64: 286, 324>}, {pipeline_mode = #tpu.pipeline_mode<synchronous>, transform_indices = @transform_4, window_bounds = array<i64: 267, 100>}, {pipeline_mode = #tpu.pipeline_mode<synchronous>, transform_indices = @transform_5, window_bounds = array<i64: 78, 144>}, {pipeline_mode = #tpu.pipeline_mode<synchronous>, transform_indices = @transform_6, window_bounds = array<i64: 92, 144>}, {pipeline_mode = #tpu.pipeline_mode<synchronous>, transform_indices = @transform_7, window_bounds = array<i64: 92, 64>}, {transform_indices = @transform_8, window_bounds = array<i64: 1, 1, 64>}]} {
    %c0 = arith.constant 0 : index
    %c0_0 = arith.constant 0 : index
    %c0_1 = arith.constant 0 : index
    %0 = vector.load %arg1[%c0, %c0_0, %c0_1] : memref<1x3x324xf32, #tpu.memory_space<vmem>>, vector<1x3x324xf32>
    %1 = vector.shape_cast %0 : vector<1x3x324xf32> to vector<3x324xf32>
    %c0_2 = arith.constant 0 : index
    %c0_3 = arith.constant 0 : index
    %2 = vector.load %arg10[%c0_2, %c0_3] : memref<3x324xf32, #tpu.memory_space<vmem>>, vector<3x324xf32>
    tpu.vector_store %arg10[%c0_2, %c0_3], %1 {strides = array<i32>} : memref<3x324xf32, #tpu.memory_space<vmem>>, vector<3x324xf32>,
    %c0_4 = arith.constant 0 : index
    %c0_5 = arith.constant 0 : index
    %3 = vector.load %arg10[%c0_4, %c0_5] : memref<3x324xf32, #tpu.memory_space<vmem>>, vector<3x286xf32>
    %c0_6 = arith.constant 0 : index
    %c0_7 = arith.constant 0 : index
    %4 = vector.load %arg16[%c0_6, %c0_7] : memref<144x286xf32, #tpu.memory_space<vmem>>, vector<3x286xf32>
    tpu.vector_store %arg16[%c0_6, %c0_7], %3 {strides = array<i32>} : memref<144x286xf32, #tpu.memory_space<vmem>>, vector<3x286xf32>,
    %c0_8 = arith.constant 0 : index
    %c1 = arith.constant 1 : index
    %5 = vector.load %arg10[%c0_8, %c1] : memref<3x324xf32, #tpu.memory_space<vmem>>, vector<3x286xf32>
    %c3 = arith.constant 3 : index
    %c0_9 = arith.constant 0 : index
    %6 = vector.load %arg16[%c3, %c0_9] : memref<144x286xf32, #tpu.memory_space<vmem>>, vector<3x286xf32>
    tpu.vector_store %arg16[%c3, %c0_9], %5 {strides = array<i32>} : memref<144x286xf32, #tpu.memory_space<vmem>>, vector<3x286xf32>,
    %c0_10 = arith.constant 0 : index
    %c2 = arith.constant 2 : index
    %7 = vector.load %arg10[%c0_10, %c2] : memref<3x324xf32, #tpu.memory_space<vmem>>, vector<3x286xf32>
    %c6 = arith.constant 6 : index
    %c0_11 = arith.constant 0 : index
    %8 = vector.load %arg16[%c6, %c0_11] : memref<144x286xf32, #tpu.memory_space<vmem>>, vector<3x286xf32>
    tpu.vector_store %arg16[%c6, %c0_11], %7 {strides = array<i32>} : memref<144x286xf32, #tpu.memory_space<vmem>>, vector<3x286xf32>,
    %c0_12 = arith.constant 0 : index
    %c18 = arith.constant 18 : index
    %9 = vector.load %arg10[%c0_12, %c18] : memref<3x324xf32, #tpu.memory_space<vmem>>, vector<3x286xf32>
    %c9 = arith.constant 9 : index
    %c0_13 = arith.constant 0 : index
    %10 = vector.load %arg16[%c9, %c0_13] : memref<144x286xf32, #tpu.memory_space<vmem>>, vector<3x286xf32>
    tpu.vector_store %arg16[%c9, %c0_13], %9 {strides = array<i32>} : memref<144x286xf32, #tpu.memory_space<vmem>>, vector<3x286xf32>,
    %c0_14 = arith.constant 0 : index
    %c19 = arith.constant 19 : index
    %11 = vector.load %arg10[%c0_14, %c19] : memref<3x324xf32, #tpu.memory_space<vmem>>, vector<3x286xf32>
    %c12 = arith.constant 12 : index
    %c0_15 = arith.constant 0 : index
    %12 = vector.load %arg16[%c12, %c0_15] : memref<144x286xf32, #tpu.memory_space<vmem>>, vector<3x286xf32>
    tpu.vector_store %arg16[%c12, %c0_15], %11 {strides = array<i32>} : memref<144x286xf32, #tpu.memory_space<vmem>>, vector<3x286xf32>,
    %c0_16 = arith.constant 0 : index
    %c20 = arith.constant 20 : index
    %13 = vector.load %arg10[%c0_16, %c20] : memref<3x324xf32, #tpu.memory_space<vmem>>, vector<3x286xf32>
    %c15 = arith.constant 15 : index
    %c0_17 = arith.constant 0 : index
    %14 = vector.load %arg16[%c15, %c0_17] : memref<144x286xf32, #tpu.memory_space<vmem>>, vector<3x286xf32>
    tpu.vector_store %arg16[%c15, %c0_17], %13 {strides = array<i32>} : memref<144x286xf32, #tpu.memory_space<vmem>>, vector<3x286xf32>,
    %c0_18 = arith.constant 0 : index
    %c36 = arith.constant 36 : index
    %15 = vector.load %arg10[%c0_18, %c36] : memref<3x324xf32, #tpu.memory_space<vmem>>, vector<3x286xf32>
    %c18_19 = arith.constant 18 : index
    %c0_20 = arith.constant 0 : index
    %16 = vector.load %arg16[%c18_19, %c0_20] : memref<144x286xf32, #tpu.memory_space<vmem>>, vector<3x286xf32>
    tpu.vector_store %arg16[%c18_19, %c0_20], %15 {strides = array<i32>} : memref<144x286xf32, #tpu.memory_space<vmem>>, vector<3x286xf32>,
    %c0_21 = arith.constant 0 : index
    %c37 = arith.constant 37 : index
    %17 = vector.load %arg10[%c0_21, %c37] : memref<3x324xf32, #tpu.memory_space<vmem>>, vector<3x286xf32>
    %c21 = arith.constant 21 : index
    %c0_22 = arith.constant 0 : index
    %18 = vector.load %arg16[%c21, %c0_22] : memref<144x286xf32, #tpu.memory_space<vmem>>, vector<3x286xf32>
    tpu.vector_store %arg16[%c21, %c0_22], %17 {strides = array<i32>} : memref<144x286xf32, #tpu.memory_space<vmem>>, vector<3x286xf32>,
    %c0_23 = arith.constant 0 : index
    %c38 = arith.constant 38 : index
    %19 = vector.load %arg10[%c0_23, %c38] : memref<3x324xf32, #tpu.memory_space<vmem>>, vector<3x286xf32>
    %c24 = arith.constant 24 : index
    %c0_24 = arith.constant 0 : index
    %20 = vector.load %arg16[%c24, %c0_24] : memref<144x286xf32, #tpu.memory_space<vmem>>, vector<3x286xf32>
    tpu.vector_store %arg16[%c24, %c0_24], %19 {strides = array<i32>} : memref<144x286xf32, #tpu.memory_space<vmem>>, vector<3x286xf32>,
    %c0_25 = arith.constant 0 : index
    %c0_26 = arith.constant 0 : index
    %21 = vector.load %arg2[%c0_25, %c0_26] : memref<64x144xf32, #tpu.memory_space<vmem>>, vector<8x27xf32>
    %c0_27 = arith.constant 0 : index
    %c0_28 = arith.constant 0 : index
    %22 = vector.load %arg16[%c0_27, %c0_28] : memref<144x286xf32, #tpu.memory_space<vmem>>, vector<27x286xf32>
    %cst = arith.constant dense<0.000000e+00> : vector<8x286xf32>
    %23 = tpu.matmul %21, %22, %cst {dimension_numbers = #tpu.dot_dimension_numbers<[1], [0], [0], [1], [0, 0, 1, 1], [], []>} : vector<8x27xf32>, vector<27x286xf32>, vector<8x286xf32> -> vector<8x286xf32>
    %c0_29 = arith.constant 0 : index
    %c0_30 = arith.constant 0 : index
    %24 = vector.load %arg3[%c0_29, %c0_30] : memref<64x1xf32, #tpu.memory_space<vmem>>, vector<8x1xf32>
    %25 = vector.broadcast %24 : vector<8x1xf32> to vector<8x286xf32>
    %26 = arith.addf %23, %25 : vector<8x286xf32>
    %cst_31 = arith.constant 0.000000e+00 : f32
    %27 = vector.broadcast %cst_31 : f32 to vector<8x286xf32>
    %28 = arith.maximumf %26, %27 : vector<8x286xf32>
    %c0_32 = arith.constant 0 : index
    %c0_33 = arith.constant 0 : index
    %29 = vector.load %arg4[%c0_32, %c0_33] : memref<286x324xf32, #tpu.memory_space<vmem>>, vector<286x324xf32>
    %cst_34 = arith.constant dense<0.000000e+00> : vector<8x324xf32>
    %30 = tpu.matmul %28, %29, %cst_34 {dimension_numbers = #tpu.dot_dimension_numbers<[1], [0], [0], [1], [0, 0, 1, 1], [], []>} : vector<8x286xf32>, vector<286x324xf32>, vector<8x324xf32> -> vector<8x324xf32>
    %c0_35 = arith.constant 0 : index
    %c0_36 = arith.constant 0 : index
    %31 = vector.load %arg11[%c0_35, %c0_36] : memref<8x324xf32, #tpu.memory_space<vmem>>, vector<8x324xf32>
    tpu.vector_store %arg11[%c0_35, %c0_36], %30 {strides = array<i32>} : memref<8x324xf32, #tpu.memory_space<vmem>>, vector<8x324xf32>,
    %c0_37 = arith.constant 0 : index
    %c0_38 = arith.constant 0 : index
    %32 = vector.load %arg11[%c0_37, %c0_38] : memref<8x324xf32, #tpu.memory_space<vmem>>, vector<8x286xf32>
    %c0_39 = arith.constant 0 : index
    %c0_40 = arith.constant 0 : index
    %33 = vector.load %arg16[%c0_39, %c0_40] : memref<144x286xf32, #tpu.memory_space<vmem>>, vector<8x286xf32>
    tpu.vector_store %arg16[%c0_39, %c0_40], %32 {strides = array<i32>} : memref<144x286xf32, #tpu.memory_space<vmem>>, vector<8x286xf32>,
    %c0_41 = arith.constant 0 : index
    %c1_42 = arith.constant 1 : index
    %34 = vector.load %arg11[%c0_41, %c1_42] : memref<8x324xf32, #tpu.memory_space<vmem>>, vector<8x286xf32>
    %c8 = arith.constant 8 : index
    %c0_43 = arith.constant 0 : index
    %35 = vector.load %arg16[%c8, %c0_43] : memref<144x286xf32, #tpu.memory_space<vmem>>, vector<8x286xf32>
    tpu.vector_store %arg16[%c8, %c0_43], %34 {strides = array<i32>} : memref<144x286xf32, #tpu.memory_space<vmem>>, vector<8x286xf32>,
    %c0_44 = arith.constant 0 : index
    %c2_45 = arith.constant 2 : index
    %36 = vector.load %arg11[%c0_44, %c2_45] : memref<8x324xf32, #tpu.memory_space<vmem>>, vector<8x286xf32>
    %c16 = arith.constant 16 : index
    %c0_46 = arith.constant 0 : index
    %37 = vector.load %arg16[%c16, %c0_46] : memref<144x286xf32, #tpu.memory_space<vmem>>, vector<8x286xf32>
    tpu.vector_store %arg16[%c16, %c0_46], %36 {strides = array<i32>} : memref<144x286xf32, #tpu.memory_space<vmem>>, vector<8x286xf32>,
    %c0_47 = arith.constant 0 : index
    %c18_48 = arith.constant 18 : index
    %38 = vector.load %arg11[%c0_47, %c18_48] : memref<8x324xf32, #tpu.memory_space<vmem>>, vector<8x286xf32>
    %c24_49 = arith.constant 24 : index
    %c0_50 = arith.constant 0 : index
    %39 = vector.load %arg16[%c24_49, %c0_50] : memref<144x286xf32, #tpu.memory_space<vmem>>, vector<8x286xf32>
    tpu.vector_store %arg16[%c24_49, %c0_50], %38 {strides = array<i32>} : memref<144x286xf32, #tpu.memory_space<vmem>>, vector<8x286xf32>,
    %c0_51 = arith.constant 0 : index
    %c19_52 = arith.constant 19 : index
    %40 = vector.load %arg11[%c0_51, %c19_52] : memref<8x324xf32, #tpu.memory_space<vmem>>, vector<8x286xf32>
    %c32 = arith.constant 32 : index
    %c0_53 = arith.constant 0 : index
    %41 = vector.load %arg16[%c32, %c0_53] : memref<144x286xf32, #tpu.memory_space<vmem>>, vector<8x286xf32>
    tpu.vector_store %arg16[%c32, %c0_53], %40 {strides = array<i32>} : memref<144x286xf32, #tpu.memory_space<vmem>>, vector<8x286xf32>,
    %c0_54 = arith.constant 0 : index
    %c20_55 = arith.constant 20 : index
    %42 = vector.load %arg11[%c0_54, %c20_55] : memref<8x324xf32, #tpu.memory_space<vmem>>, vector<8x286xf32>
    %c40 = arith.constant 40 : index
    %c0_56 = arith.constant 0 : index
    %43 = vector.load %arg16[%c40, %c0_56] : memref<144x286xf32, #tpu.memory_space<vmem>>, vector<8x286xf32>
    tpu.vector_store %arg16[%c40, %c0_56], %42 {strides = array<i32>} : memref<144x286xf32, #tpu.memory_space<vmem>>, vector<8x286xf32>,
    %c0_57 = arith.constant 0 : index
    %c36_58 = arith.constant 36 : index
    %44 = vector.load %arg11[%c0_57, %c36_58] : memref<8x324xf32, #tpu.memory_space<vmem>>, vector<8x286xf32>
    %c48 = arith.constant 48 : index
    %c0_59 = arith.constant 0 : index
    %45 = vector.load %arg16[%c48, %c0_59] : memref<144x286xf32, #tpu.memory_space<vmem>>, vector<8x286xf32>
    tpu.vector_store %arg16[%c48, %c0_59], %44 {strides = array<i32>} : memref<144x286xf32, #tpu.memory_space<vmem>>, vector<8x286xf32>,
    %c0_60 = arith.constant 0 : index
    %c37_61 = arith.constant 37 : index
    %46 = vector.load %arg11[%c0_60, %c37_61] : memref<8x324xf32, #tpu.memory_space<vmem>>, vector<8x286xf32>
    %c56 = arith.constant 56 : index
    %c0_62 = arith.constant 0 : index
    %47 = vector.load %arg16[%c56, %c0_62] : memref<144x286xf32, #tpu.memory_space<vmem>>, vector<8x286xf32>
    tpu.vector_store %arg16[%c56, %c0_62], %46 {strides = array<i32>} : memref<144x286xf32, #tpu.memory_space<vmem>>, vector<8x286xf32>,
    %c0_63 = arith.constant 0 : index
    %c38_64 = arith.constant 38 : index
    %48 = vector.load %arg11[%c0_63, %c38_64] : memref<8x324xf32, #tpu.memory_space<vmem>>, vector<8x286xf32>
    %c64 = arith.constant 64 : index
    %c0_65 = arith.constant 0 : index
    %49 = vector.load %arg16[%c64, %c0_65] : memref<144x286xf32, #tpu.memory_space<vmem>>, vector<8x286xf32>
    tpu.vector_store %arg16[%c64, %c0_65], %48 {strides = array<i32>} : memref<144x286xf32, #tpu.memory_space<vmem>>, vector<8x286xf32>,
    %c8_66 = arith.constant 8 : index
    %c0_67 = arith.constant 0 : index
    %50 = vector.load %arg2[%c8_66, %c0_67] : memref<64x144xf32, #tpu.memory_space<vmem>>, vector<8x72xf32>
    %c0_68 = arith.constant 0 : index
    %c0_69 = arith.constant 0 : index
    %51 = vector.load %arg16[%c0_68, %c0_69] : memref<144x286xf32, #tpu.memory_space<vmem>>, vector<72x286xf32>
    %cst_70 = arith.constant dense<0.000000e+00> : vector<8x286xf32>
    %52 = tpu.matmul %50, %51, %cst_70 {dimension_numbers = #tpu.dot_dimension_numbers<[1], [0], [0], [1], [0, 0, 1, 1], [], []>} : vector<8x72xf32>, vector<72x286xf32>, vector<8x286xf32> -> vector<8x286xf32>
    %c8_71 = arith.constant 8 : index
    %c0_72 = arith.constant 0 : index
    %53 = vector.load %arg3[%c8_71, %c0_72] : memref<64x1xf32, #tpu.memory_space<vmem>>, vector<8x1xf32>
    %54 = vector.broadcast %53 : vector<8x1xf32> to vector<8x286xf32>
    %55 = arith.addf %52, %54 : vector<8x286xf32>
    %cst_73 = arith.constant 0.000000e+00 : f32
    %56 = vector.broadcast %cst_73 : f32 to vector<8x286xf32>
    %57 = arith.maximumf %55, %56 : vector<8x286xf32>
    %c0_74 = arith.constant 0 : index
    %c0_75 = arith.constant 0 : index
    %58 = vector.load %arg15[%c0_74, %c0_75] : memref<8x286xf32, #tpu.memory_space<vmem>>, vector<8x286xf32>
    tpu.vector_store %arg15[%c0_74, %c0_75], %57 {strides = array<i32>} : memref<8x286xf32, #tpu.memory_space<vmem>>, vector<8x286xf32>,
    %c0_76 = arith.constant 0 : index
    %c0_77 = arith.constant 0 : index
    %59 = vector.load %arg15[%c0_76, %c0_77] : memref<8x286xf32, #tpu.memory_space<vmem>>, vector<8x267xf32>
    %c0_78 = arith.constant 0 : index
    %c1_79 = arith.constant 1 : index
    %60 = vector.load %arg15[%c0_78, %c1_79] : memref<8x286xf32, #tpu.memory_space<vmem>>, vector<8x267xf32>
    %61 = arith.maximumf %59, %60 : vector<8x267xf32>
    %c0_80 = arith.constant 0 : index
    %c18_81 = arith.constant 18 : index
    %62 = vector.load %arg15[%c0_80, %c18_81] : memref<8x286xf32, #tpu.memory_space<vmem>>, vector<8x267xf32>
    %c0_82 = arith.constant 0 : index
    %c19_83 = arith.constant 19 : index
    %63 = vector.load %arg15[%c0_82, %c19_83] : memref<8x286xf32, #tpu.memory_space<vmem>>, vector<8x267xf32>
    %64 = arith.maximumf %62, %63 : vector<8x267xf32>
    %65 = arith.maximumf %61, %64 : vector<8x267xf32>
    %c0_84 = arith.constant 0 : index
    %c0_85 = arith.constant 0 : index
    %66 = vector.load %arg5[%c0_84, %c0_85] : memref<267x100xf32, #tpu.memory_space<vmem>>, vector<267x100xf32>
    %cst_86 = arith.constant dense<0.000000e+00> : vector<8x100xf32>
    %67 = tpu.matmul %65, %66, %cst_86 {dimension_numbers = #tpu.dot_dimension_numbers<[1], [0], [0], [1], [0, 0, 1, 1], [], []>} : vector<8x267xf32>, vector<267x100xf32>, vector<8x100xf32> -> vector<8x100xf32>
    %c0_87 = arith.constant 0 : index
    %c0_88 = arith.constant 0 : index
    %68 = vector.load %arg12[%c0_87, %c0_88] : memref<8x100xf32, #tpu.memory_space<vmem>>, vector<8x100xf32>
    tpu.vector_store %arg12[%c0_87, %c0_88], %67 {strides = array<i32>} : memref<8x100xf32, #tpu.memory_space<vmem>>, vector<8x100xf32>,
    %c0_89 = arith.constant 0 : index
    %c0_90 = arith.constant 0 : index
    %69 = vector.load %arg12[%c0_89, %c0_90] : memref<8x100xf32, #tpu.memory_space<vmem>>, vector<8x78xf32>
    %c0_91 = arith.constant 0 : index
    %c0_92 = arith.constant 0 : index
    %70 = vector.load %arg16[%c0_91, %c0_92] : memref<144x286xf32, #tpu.memory_space<vmem>>, vector<8x78xf32>
    tpu.vector_store %arg16[%c0_91, %c0_92], %69 {strides = array<i32>} : memref<144x286xf32, #tpu.memory_space<vmem>>, vector<8x78xf32>,
    %c0_93 = arith.constant 0 : index
    %c1_94 = arith.constant 1 : index
    %71 = vector.load %arg12[%c0_93, %c1_94] : memref<8x100xf32, #tpu.memory_space<vmem>>, vector<8x78xf32>
    %c8_95 = arith.constant 8 : index
    %c0_96 = arith.constant 0 : index
    %72 = vector.load %arg16[%c8_95, %c0_96] : memref<144x286xf32, #tpu.memory_space<vmem>>, vector<8x78xf32>
    tpu.vector_store %arg16[%c8_95, %c0_96], %71 {strides = array<i32>} : memref<144x286xf32, #tpu.memory_space<vmem>>, vector<8x78xf32>,
    %c0_97 = arith.constant 0 : index
    %c2_98 = arith.constant 2 : index
    %73 = vector.load %arg12[%c0_97, %c2_98] : memref<8x100xf32, #tpu.memory_space<vmem>>, vector<8x78xf32>
    %c16_99 = arith.constant 16 : index
    %c0_100 = arith.constant 0 : index
    %74 = vector.load %arg16[%c16_99, %c0_100] : memref<144x286xf32, #tpu.memory_space<vmem>>, vector<8x78xf32>
    tpu.vector_store %arg16[%c16_99, %c0_100], %73 {strides = array<i32>} : memref<144x286xf32, #tpu.memory_space<vmem>>, vector<8x78xf32>,
    %c0_101 = arith.constant 0 : index
    %c10 = arith.constant 10 : index
    %75 = vector.load %arg12[%c0_101, %c10] : memref<8x100xf32, #tpu.memory_space<vmem>>, vector<8x78xf32>
    %c24_102 = arith.constant 24 : index
    %c0_103 = arith.constant 0 : index
    %76 = vector.load %arg16[%c24_102, %c0_103] : memref<144x286xf32, #tpu.memory_space<vmem>>, vector<8x78xf32>
    tpu.vector_store %arg16[%c24_102, %c0_103], %75 {strides = array<i32>} : memref<144x286xf32, #tpu.memory_space<vmem>>, vector<8x78xf32>,
    %c0_104 = arith.constant 0 : index
    %c11 = arith.constant 11 : index
    %77 = vector.load %arg12[%c0_104, %c11] : memref<8x100xf32, #tpu.memory_space<vmem>>, vector<8x78xf32>
    %c32_105 = arith.constant 32 : index
    %c0_106 = arith.constant 0 : index
    %78 = vector.load %arg16[%c32_105, %c0_106] : memref<144x286xf32, #tpu.memory_space<vmem>>, vector<8x78xf32>
    tpu.vector_store %arg16[%c32_105, %c0_106], %77 {strides = array<i32>} : memref<144x286xf32, #tpu.memory_space<vmem>>, vector<8x78xf32>,
    %c0_107 = arith.constant 0 : index
    %c12_108 = arith.constant 12 : index
    %79 = vector.load %arg12[%c0_107, %c12_108] : memref<8x100xf32, #tpu.memory_space<vmem>>, vector<8x78xf32>
    %c40_109 = arith.constant 40 : index
    %c0_110 = arith.constant 0 : index
    %80 = vector.load %arg16[%c40_109, %c0_110] : memref<144x286xf32, #tpu.memory_space<vmem>>, vector<8x78xf32>
    tpu.vector_store %arg16[%c40_109, %c0_110], %79 {strides = array<i32>} : memref<144x286xf32, #tpu.memory_space<vmem>>, vector<8x78xf32>,
    %c0_111 = arith.constant 0 : index
    %c20_112 = arith.constant 20 : index
    %81 = vector.load %arg12[%c0_111, %c20_112] : memref<8x100xf32, #tpu.memory_space<vmem>>, vector<8x78xf32>
    %c48_113 = arith.constant 48 : index
    %c0_114 = arith.constant 0 : index
    %82 = vector.load %arg16[%c48_113, %c0_114] : memref<144x286xf32, #tpu.memory_space<vmem>>, vector<8x78xf32>
    tpu.vector_store %arg16[%c48_113, %c0_114], %81 {strides = array<i32>} : memref<144x286xf32, #tpu.memory_space<vmem>>, vector<8x78xf32>,
    %c0_115 = arith.constant 0 : index
    %c21_116 = arith.constant 21 : index
    %83 = vector.load %arg12[%c0_115, %c21_116] : memref<8x100xf32, #tpu.memory_space<vmem>>, vector<8x78xf32>
    %c56_117 = arith.constant 56 : index
    %c0_118 = arith.constant 0 : index
    %84 = vector.load %arg16[%c56_117, %c0_118] : memref<144x286xf32, #tpu.memory_space<vmem>>, vector<8x78xf32>
    tpu.vector_store %arg16[%c56_117, %c0_118], %83 {strides = array<i32>} : memref<144x286xf32, #tpu.memory_space<vmem>>, vector<8x78xf32>,
    %c0_119 = arith.constant 0 : index
    %c22 = arith.constant 22 : index
    %85 = vector.load %arg12[%c0_119, %c22] : memref<8x100xf32, #tpu.memory_space<vmem>>, vector<8x78xf32>
    %c64_120 = arith.constant 64 : index
    %c0_121 = arith.constant 0 : index
    %86 = vector.load %arg16[%c64_120, %c0_121] : memref<144x286xf32, #tpu.memory_space<vmem>>, vector<8x78xf32>
    tpu.vector_store %arg16[%c64_120, %c0_121], %85 {strides = array<i32>} : memref<144x286xf32, #tpu.memory_space<vmem>>, vector<8x78xf32>,
    %c16_122 = arith.constant 16 : index
    %c0_123 = arith.constant 0 : index
    %87 = vector.load %arg2[%c16_122, %c0_123] : memref<64x144xf32, #tpu.memory_space<vmem>>, vector<16x72xf32>
    %c0_124 = arith.constant 0 : index
    %c0_125 = arith.constant 0 : index
    %88 = vector.load %arg16[%c0_124, %c0_125] : memref<144x286xf32, #tpu.memory_space<vmem>>, vector<72x78xf32>
    %cst_126 = arith.constant dense<0.000000e+00> : vector<16x78xf32>
    %89 = tpu.matmul %87, %88, %cst_126 {dimension_numbers = #tpu.dot_dimension_numbers<[1], [0], [0], [1], [0, 0, 1, 1], [], []>} : vector<16x72xf32>, vector<72x78xf32>, vector<16x78xf32> -> vector<16x78xf32>
    %c16_127 = arith.constant 16 : index
    %c0_128 = arith.constant 0 : index
    %90 = vector.load %arg3[%c16_127, %c0_128] : memref<64x1xf32, #tpu.memory_space<vmem>>, vector<16x1xf32>
    %91 = vector.broadcast %90 : vector<16x1xf32> to vector<16x78xf32>
    %92 = arith.addf %89, %91 : vector<16x78xf32>
    %cst_129 = arith.constant 0.000000e+00 : f32
    %93 = vector.broadcast %cst_129 : f32 to vector<16x78xf32>
    %94 = arith.maximumf %92, %93 : vector<16x78xf32>
    %c0_130 = arith.constant 0 : index
    %c0_131 = arith.constant 0 : index
    %95 = vector.load %arg6[%c0_130, %c0_131] : memref<78x144xf32, #tpu.memory_space<vmem>>, vector<78x144xf32>
    %cst_132 = arith.constant dense<0.000000e+00> : vector<16x144xf32>
    %96 = tpu.matmul %94, %95, %cst_132 {dimension_numbers = #tpu.dot_dimension_numbers<[1], [0], [0], [1], [0, 0, 1, 1], [], []>} : vector<16x78xf32>, vector<78x144xf32>, vector<16x144xf32> -> vector<16x144xf32>
    %c0_133 = arith.constant 0 : index
    %c0_134 = arith.constant 0 : index
    %97 = vector.load %arg13[%c0_133, %c0_134] : memref<16x144xf32, #tpu.memory_space<vmem>>, vector<16x144xf32>
    tpu.vector_store %arg13[%c0_133, %c0_134], %96 {strides = array<i32>} : memref<16x144xf32, #tpu.memory_space<vmem>>, vector<16x144xf32>,
    %c0_135 = arith.constant 0 : index
    %c0_136 = arith.constant 0 : index
    %98 = vector.load %arg13[%c0_135, %c0_136] : memref<16x144xf32, #tpu.memory_space<vmem>>, vector<16x92xf32>
    %c0_137 = arith.constant 0 : index
    %c0_138 = arith.constant 0 : index
    %99 = vector.load %arg16[%c0_137, %c0_138] : memref<144x286xf32, #tpu.memory_space<vmem>>, vector<16x92xf32>
    tpu.vector_store %arg16[%c0_137, %c0_138], %98 {strides = array<i32>} : memref<144x286xf32, #tpu.memory_space<vmem>>, vector<16x92xf32>,
    %c0_139 = arith.constant 0 : index
    %c2_140 = arith.constant 2 : index
    %100 = vector.load %arg13[%c0_139, %c2_140] : memref<16x144xf32, #tpu.memory_space<vmem>>, vector<16x92xf32>
    %c16_141 = arith.constant 16 : index
    %c0_142 = arith.constant 0 : index
    %101 = vector.load %arg16[%c16_141, %c0_142] : memref<144x286xf32, #tpu.memory_space<vmem>>, vector<16x92xf32>
    tpu.vector_store %arg16[%c16_141, %c0_142], %100 {strides = array<i32>} : memref<144x286xf32, #tpu.memory_space<vmem>>, vector<16x92xf32>,
    %c0_143 = arith.constant 0 : index
    %c4 = arith.constant 4 : index
    %102 = vector.load %arg13[%c0_143, %c4] : memref<16x144xf32, #tpu.memory_space<vmem>>, vector<16x92xf32>
    %c32_144 = arith.constant 32 : index
    %c0_145 = arith.constant 0 : index
    %103 = vector.load %arg16[%c32_144, %c0_145] : memref<144x286xf32, #tpu.memory_space<vmem>>, vector<16x92xf32>
    tpu.vector_store %arg16[%c32_144, %c0_145], %102 {strides = array<i32>} : memref<144x286xf32, #tpu.memory_space<vmem>>, vector<16x92xf32>,
    %c0_146 = arith.constant 0 : index
    %c24_147 = arith.constant 24 : index
    %104 = vector.load %arg13[%c0_146, %c24_147] : memref<16x144xf32, #tpu.memory_space<vmem>>, vector<16x92xf32>
    %c48_148 = arith.constant 48 : index
    %c0_149 = arith.constant 0 : index
    %105 = vector.load %arg16[%c48_148, %c0_149] : memref<144x286xf32, #tpu.memory_space<vmem>>, vector<16x92xf32>
    tpu.vector_store %arg16[%c48_148, %c0_149], %104 {strides = array<i32>} : memref<144x286xf32, #tpu.memory_space<vmem>>, vector<16x92xf32>,
    %c0_150 = arith.constant 0 : index
    %c26 = arith.constant 26 : index
    %106 = vector.load %arg13[%c0_150, %c26] : memref<16x144xf32, #tpu.memory_space<vmem>>, vector<16x92xf32>
    %c64_151 = arith.constant 64 : index
    %c0_152 = arith.constant 0 : index
    %107 = vector.load %arg16[%c64_151, %c0_152] : memref<144x286xf32, #tpu.memory_space<vmem>>, vector<16x92xf32>
    tpu.vector_store %arg16[%c64_151, %c0_152], %106 {strides = array<i32>} : memref<144x286xf32, #tpu.memory_space<vmem>>, vector<16x92xf32>,
    %c0_153 = arith.constant 0 : index
    %c28 = arith.constant 28 : index
    %108 = vector.load %arg13[%c0_153, %c28] : memref<16x144xf32, #tpu.memory_space<vmem>>, vector<16x92xf32>
    %c80 = arith.constant 80 : index
    %c0_154 = arith.constant 0 : index
    %109 = vector.load %arg16[%c80, %c0_154] : memref<144x286xf32, #tpu.memory_space<vmem>>, vector<16x92xf32>
    tpu.vector_store %arg16[%c80, %c0_154], %108 {strides = array<i32>} : memref<144x286xf32, #tpu.memory_space<vmem>>, vector<16x92xf32>,
    %c0_155 = arith.constant 0 : index
    %c48_156 = arith.constant 48 : index
    %110 = vector.load %arg13[%c0_155, %c48_156] : memref<16x144xf32, #tpu.memory_space<vmem>>, vector<16x92xf32>
    %c96 = arith.constant 96 : index
    %c0_157 = arith.constant 0 : index
    %111 = vector.load %arg16[%c96, %c0_157] : memref<144x286xf32, #tpu.memory_space<vmem>>, vector<16x92xf32>
    tpu.vector_store %arg16[%c96, %c0_157], %110 {strides = array<i32>} : memref<144x286xf32, #tpu.memory_space<vmem>>, vector<16x92xf32>,
    %c0_158 = arith.constant 0 : index
    %c50 = arith.constant 50 : index
    %112 = vector.load %arg13[%c0_158, %c50] : memref<16x144xf32, #tpu.memory_space<vmem>>, vector<16x92xf32>
    %c112 = arith.constant 112 : index
    %c0_159 = arith.constant 0 : index
    %113 = vector.load %arg16[%c112, %c0_159] : memref<144x286xf32, #tpu.memory_space<vmem>>, vector<16x92xf32>
    tpu.vector_store %arg16[%c112, %c0_159], %112 {strides = array<i32>} : memref<144x286xf32, #tpu.memory_space<vmem>>, vector<16x92xf32>,
    %c0_160 = arith.constant 0 : index
    %c52 = arith.constant 52 : index
    %114 = vector.load %arg13[%c0_160, %c52] : memref<16x144xf32, #tpu.memory_space<vmem>>, vector<16x92xf32>
    %c128 = arith.constant 128 : index
    %c0_161 = arith.constant 0 : index
    %115 = vector.load %arg16[%c128, %c0_161] : memref<144x286xf32, #tpu.memory_space<vmem>>, vector<16x92xf32>
    tpu.vector_store %arg16[%c128, %c0_161], %114 {strides = array<i32>} : memref<144x286xf32, #tpu.memory_space<vmem>>, vector<16x92xf32>,
    %c32_162 = arith.constant 32 : index
    %c0_163 = arith.constant 0 : index
    %116 = vector.load %arg2[%c32_162, %c0_163] : memref<64x144xf32, #tpu.memory_space<vmem>>, vector<16x144xf32>
    %c0_164 = arith.constant 0 : index
    %c0_165 = arith.constant 0 : index
    %117 = vector.load %arg16[%c0_164, %c0_165] : memref<144x286xf32, #tpu.memory_space<vmem>>, vector<144x92xf32>
    %cst_166 = arith.constant dense<0.000000e+00> : vector<16x92xf32>
    %118 = tpu.matmul %116, %117, %cst_166 {dimension_numbers = #tpu.dot_dimension_numbers<[1], [0], [0], [1], [0, 0, 1, 1], [], []>} : vector<16x144xf32>, vector<144x92xf32>, vector<16x92xf32> -> vector<16x92xf32>
    %c32_167 = arith.constant 32 : index
    %c0_168 = arith.constant 0 : index
    %119 = vector.load %arg3[%c32_167, %c0_168] : memref<64x1xf32, #tpu.memory_space<vmem>>, vector<16x1xf32>
    %120 = vector.broadcast %119 : vector<16x1xf32> to vector<16x92xf32>
    %121 = arith.addf %118, %120 : vector<16x92xf32>
    %cst_169 = arith.constant 0.000000e+00 : f32
    %122 = vector.broadcast %cst_169 : f32 to vector<16x92xf32>
    %123 = arith.maximumf %121, %122 : vector<16x92xf32>
    %c0_170 = arith.constant 0 : index
    %c0_171 = arith.constant 0 : index
    %124 = vector.load %arg7[%c0_170, %c0_171] : memref<92x144xf32, #tpu.memory_space<vmem>>, vector<92x144xf32>
    %cst_172 = arith.constant dense<0.000000e+00> : vector<16x144xf32>
    %125 = tpu.matmul %123, %124, %cst_172 {dimension_numbers = #tpu.dot_dimension_numbers<[1], [0], [0], [1], [0, 0, 1, 1], [], []>} : vector<16x92xf32>, vector<92x144xf32>, vector<16x144xf32> -> vector<16x144xf32>
    %c0_173 = arith.constant 0 : index
    %c0_174 = arith.constant 0 : index
    %126 = vector.load %arg14[%c0_173, %c0_174] : memref<16x144xf32, #tpu.memory_space<vmem>>, vector<16x144xf32>
    tpu.vector_store %arg14[%c0_173, %c0_174], %125 {strides = array<i32>} : memref<16x144xf32, #tpu.memory_space<vmem>>, vector<16x144xf32>,
    %c0_175 = arith.constant 0 : index
    %c0_176 = arith.constant 0 : index
    %127 = vector.load %arg14[%c0_175, %c0_176] : memref<16x144xf32, #tpu.memory_space<vmem>>, vector<16x92xf32>
    %c0_177 = arith.constant 0 : index
    %c0_178 = arith.constant 0 : index
    %128 = vector.load %arg16[%c0_177, %c0_178] : memref<144x286xf32, #tpu.memory_space<vmem>>, vector<16x92xf32>
    tpu.vector_store %arg16[%c0_177, %c0_178], %127 {strides = array<i32>} : memref<144x286xf32, #tpu.memory_space<vmem>>, vector<16x92xf32>,
    %c0_179 = arith.constant 0 : index
    %c2_180 = arith.constant 2 : index
    %129 = vector.load %arg14[%c0_179, %c2_180] : memref<16x144xf32, #tpu.memory_space<vmem>>, vector<16x92xf32>
    %c16_181 = arith.constant 16 : index
    %c0_182 = arith.constant 0 : index
    %130 = vector.load %arg16[%c16_181, %c0_182] : memref<144x286xf32, #tpu.memory_space<vmem>>, vector<16x92xf32>
    tpu.vector_store %arg16[%c16_181, %c0_182], %129 {strides = array<i32>} : memref<144x286xf32, #tpu.memory_space<vmem>>, vector<16x92xf32>,
    %c0_183 = arith.constant 0 : index
    %c4_184 = arith.constant 4 : index
    %131 = vector.load %arg14[%c0_183, %c4_184] : memref<16x144xf32, #tpu.memory_space<vmem>>, vector<16x92xf32>
    %c32_185 = arith.constant 32 : index
    %c0_186 = arith.constant 0 : index
    %132 = vector.load %arg16[%c32_185, %c0_186] : memref<144x286xf32, #tpu.memory_space<vmem>>, vector<16x92xf32>
    tpu.vector_store %arg16[%c32_185, %c0_186], %131 {strides = array<i32>} : memref<144x286xf32, #tpu.memory_space<vmem>>, vector<16x92xf32>,
    %c0_187 = arith.constant 0 : index
    %c24_188 = arith.constant 24 : index
    %133 = vector.load %arg14[%c0_187, %c24_188] : memref<16x144xf32, #tpu.memory_space<vmem>>, vector<16x92xf32>
    %c48_189 = arith.constant 48 : index
    %c0_190 = arith.constant 0 : index
    %134 = vector.load %arg16[%c48_189, %c0_190] : memref<144x286xf32, #tpu.memory_space<vmem>>, vector<16x92xf32>
    tpu.vector_store %arg16[%c48_189, %c0_190], %133 {strides = array<i32>} : memref<144x286xf32, #tpu.memory_space<vmem>>, vector<16x92xf32>,
    %c0_191 = arith.constant 0 : index
    %c26_192 = arith.constant 26 : index
    %135 = vector.load %arg14[%c0_191, %c26_192] : memref<16x144xf32, #tpu.memory_space<vmem>>, vector<16x92xf32>
    %c64_193 = arith.constant 64 : index
    %c0_194 = arith.constant 0 : index
    %136 = vector.load %arg16[%c64_193, %c0_194] : memref<144x286xf32, #tpu.memory_space<vmem>>, vector<16x92xf32>
    tpu.vector_store %arg16[%c64_193, %c0_194], %135 {strides = array<i32>} : memref<144x286xf32, #tpu.memory_space<vmem>>, vector<16x92xf32>,
    %c0_195 = arith.constant 0 : index
    %c28_196 = arith.constant 28 : index
    %137 = vector.load %arg14[%c0_195, %c28_196] : memref<16x144xf32, #tpu.memory_space<vmem>>, vector<16x92xf32>
    %c80_197 = arith.constant 80 : index
    %c0_198 = arith.constant 0 : index
    %138 = vector.load %arg16[%c80_197, %c0_198] : memref<144x286xf32, #tpu.memory_space<vmem>>, vector<16x92xf32>
    tpu.vector_store %arg16[%c80_197, %c0_198], %137 {strides = array<i32>} : memref<144x286xf32, #tpu.memory_space<vmem>>, vector<16x92xf32>,
    %c0_199 = arith.constant 0 : index
    %c48_200 = arith.constant 48 : index
    %139 = vector.load %arg14[%c0_199, %c48_200] : memref<16x144xf32, #tpu.memory_space<vmem>>, vector<16x92xf32>
    %c96_201 = arith.constant 96 : index
    %c0_202 = arith.constant 0 : index
    %140 = vector.load %arg16[%c96_201, %c0_202] : memref<144x286xf32, #tpu.memory_space<vmem>>, vector<16x92xf32>
    tpu.vector_store %arg16[%c96_201, %c0_202], %139 {strides = array<i32>} : memref<144x286xf32, #tpu.memory_space<vmem>>, vector<16x92xf32>,
    %c0_203 = arith.constant 0 : index
    %c50_204 = arith.constant 50 : index
    %141 = vector.load %arg14[%c0_203, %c50_204] : memref<16x144xf32, #tpu.memory_space<vmem>>, vector<16x92xf32>
    %c112_205 = arith.constant 112 : index
    %c0_206 = arith.constant 0 : index
    %142 = vector.load %arg16[%c112_205, %c0_206] : memref<144x286xf32, #tpu.memory_space<vmem>>, vector<16x92xf32>
    tpu.vector_store %arg16[%c112_205, %c0_206], %141 {strides = array<i32>} : memref<144x286xf32, #tpu.memory_space<vmem>>, vector<16x92xf32>,
    %c0_207 = arith.constant 0 : index
    %c52_208 = arith.constant 52 : index
    %143 = vector.load %arg14[%c0_207, %c52_208] : memref<16x144xf32, #tpu.memory_space<vmem>>, vector<16x92xf32>
    %c128_209 = arith.constant 128 : index
    %c0_210 = arith.constant 0 : index
    %144 = vector.load %arg16[%c128_209, %c0_210] : memref<144x286xf32, #tpu.memory_space<vmem>>, vector<16x92xf32>
    tpu.vector_store %arg16[%c128_209, %c0_210], %143 {strides = array<i32>} : memref<144x286xf32, #tpu.memory_space<vmem>>, vector<16x92xf32>,
    %c48_211 = arith.constant 48 : index
    %c0_212 = arith.constant 0 : index
    %145 = vector.load %arg2[%c48_211, %c0_212] : memref<64x144xf32, #tpu.memory_space<vmem>>, vector<8x144xf32>
    %c0_213 = arith.constant 0 : index
    %c0_214 = arith.constant 0 : index
    %146 = vector.load %arg16[%c0_213, %c0_214] : memref<144x286xf32, #tpu.memory_space<vmem>>, vector<144x92xf32>
    %cst_215 = arith.constant dense<0.000000e+00> : vector<8x92xf32>
    %147 = tpu.matmul %145, %146, %cst_215 {dimension_numbers = #tpu.dot_dimension_numbers<[1], [0], [0], [1], [0, 0, 1, 1], [], []>} : vector<8x144xf32>, vector<144x92xf32>, vector<8x92xf32> -> vector<8x92xf32>
    %c48_216 = arith.constant 48 : index
    %c0_217 = arith.constant 0 : index
    %148 = vector.load %arg3[%c48_216, %c0_217] : memref<64x1xf32, #tpu.memory_space<vmem>>, vector<8x1xf32>
    %149 = vector.broadcast %148 : vector<8x1xf32> to vector<8x92xf32>
    %150 = arith.addf %147, %149 : vector<8x92xf32>
    %cst_218 = arith.constant 0.000000e+00 : f32
    %151 = vector.broadcast %cst_218 : f32 to vector<8x92xf32>
    %152 = arith.maximumf %150, %151 : vector<8x92xf32>
    %c0_219 = arith.constant 0 : index
    %c0_220 = arith.constant 0 : index
    %153 = vector.load %arg8[%c0_219, %c0_220] : memref<92x64xf32, #tpu.memory_space<vmem>>, vector<92x64xf32>
    %cst_221 = arith.constant dense<0.000000e+00> : vector<8x64xf32>
    %154 = tpu.matmul %152, %153, %cst_221 {dimension_numbers = #tpu.dot_dimension_numbers<[1], [0], [0], [1], [0, 0, 1, 1], [], []>} : vector<8x92xf32>, vector<92x64xf32>, vector<8x64xf32> -> vector<8x64xf32>
    %c56_222 = arith.constant 56 : index
    %c0_223 = arith.constant 0 : index
    %155 = vector.load %arg2[%c56_222, %c0_223] : memref<64x144xf32, #tpu.memory_space<vmem>>, vector<1x8xf32>
    %cst_224 = arith.constant dense<0.000000e+00> : vector<1x64xf32>
    %156 = tpu.matmul %155, %154, %cst_224 {dimension_numbers = #tpu.dot_dimension_numbers<[1], [0], [0], [1], [0, 0, 1, 1], [], []>} : vector<1x8xf32>, vector<8x64xf32>, vector<1x64xf32> -> vector<1x64xf32>
    %c56_225 = arith.constant 56 : index
    %c0_226 = arith.constant 0 : index
    %157 = vector.load %arg3[%c56_225, %c0_226] : memref<64x1xf32, #tpu.memory_space<vmem>>, vector<1x1xf32>
    %158 = vector.broadcast %157 : vector<1x1xf32> to vector<1x64xf32>
    %159 = arith.addf %156, %158 : vector<1x64xf32>
    %160 = vector.shape_cast %159 : vector<1x64xf32> to vector<1x1x64xf32>
    %c0_227 = arith.constant 0 : index
    %c0_228 = arith.constant 0 : index
    %c0_229 = arith.constant 0 : index
    %161 = vector.load %arg9[%c0_227, %c0_228, %c0_229] : memref<1x1x64xf32, #tpu.memory_space<vmem>>, vector<1x1x64xf32>
    tpu.vector_store %arg9[%c0_227, %c0_228, %c0_229], %160 {strides = array<i32>} : memref<1x1x64xf32, #tpu.memory_space<vmem>>, vector<1x1x64xf32>,
    return
  }
  func.func @transform_0(%arg0: i32) -> (i32, i32, i32) {
    %c0_i32 = arith.constant 0 : i32
    %c0_i32_0 = arith.constant 0 : i32
    %c0_i32_1 = arith.constant 0 : i32
    return %arg0, %c0_i32, %c0_i32_0 : i32, i32, i32
  }
  func.func @transform_1(%arg0: i32) -> (i32, i32) {
    %c0_i32 = arith.constant 0 : i32
    %c0_i32_0 = arith.constant 0 : i32
    %c0_i32_1 = arith.constant 0 : i32
    return %c0_i32, %c0_i32_0 : i32, i32
  }
  func.func @transform_2(%arg0: i32) -> (i32, i32) {
    %c0_i32 = arith.constant 0 : i32
    %c0_i32_0 = arith.constant 0 : i32
    %c0_i32_1 = arith.constant 0 : i32
    return %c0_i32, %c0_i32_0 : i32, i32
  }
  func.func @transform_3(%arg0: i32) -> (i32, i32) {
    %c0_i32 = arith.constant 0 : i32
    %c0_i32_0 = arith.constant 0 : i32
    %c0_i32_1 = arith.constant 0 : i32
    return %c0_i32, %c0_i32_0 : i32, i32
  }
  func.func @transform_4(%arg0: i32) -> (i32, i32) {
    %c0_i32 = arith.constant 0 : i32
    %c0_i32_0 = arith.constant 0 : i32
    %c0_i32_1 = arith.constant 0 : i32
    return %c0_i32, %c0_i32_0 : i32, i32
  }
  func.func @transform_5(%arg0: i32) -> (i32, i32) {
    %c0_i32 = arith.constant 0 : i32
    %c0_i32_0 = arith.constant 0 : i32
    %c0_i32_1 = arith.constant 0 : i32
    return %c0_i32, %c0_i32_0 : i32, i32
  }
  func.func @transform_6(%arg0: i32) -> (i32, i32) {
    %c0_i32 = arith.constant 0 : i32
    %c0_i32_0 = arith.constant 0 : i32
    %c0_i32_1 = arith.constant 0 : i32
    return %c0_i32, %c0_i32_0 : i32, i32
  }
  func.func @transform_7(%arg0: i32) -> (i32, i32) {
    %c0_i32 = arith.constant 0 : i32
    %c0_i32_0 = arith.constant 0 : i32
    %c0_i32_1 = arith.constant 0 : i32
    return %c0_i32, %c0_i32_0 : i32, i32
  }
  func.func @transform_8(%arg0: i32) -> (i32, i32, i32) {
    %c0_i32 = arith.constant 0 : i32
    %c0_i32_0 = arith.constant 0 : i32
    %c0_i32_1 = arith.constant 0 : i32
    return %arg0, %c0_i32, %c0_i32_0 : i32, i32, i32
  }
}

</mosaic_0001>

<bundles_post_ra>
// kernel: feature_extractor_forward.1
= control target key start
LH: loop header
LB: loop body
LE: loop exit
PB: predicated region body
PF: predicated region fallthrough
CT: control target
= control target key end

     0   :  { %s3479_s27 = smov 0   ;;  %s4482_s0 = inlined_call_operand.vmem [shape: f32[2,3,324], index: 0, kind: input, shape index: {}]   ;;  %s4483_s1 = inlined_call_operand.vmem [shape: f32[64,144], index: 1, kind: input, shape index: {}]   ;;  %s4484_s2 = inlined_call_operand.vmem [shape: f32[64,1], index: 2, kind: input, shape index: {}]   ;;  %s4485_s3 = inlined_call_operand.vmem [shape: f32[286,324], index: 3, kind: input, shape index: {}]   ;;  %s4486_s4 = inlined_call_operand.vmem [shape: f32[267,100], index: 4, kind: input, shape index: {}]   ;;  %s4487_s5 = inlined_call_operand.vmem [shape: f32[78,144], index: 5, kind: input, shape index: {}]   ;;  %s4488_s6 = inlined_call_operand.vmem [shape: f32[92,144], index: 6, kind: input, shape index: {}]   ;;  %s4489_s7 = inlined_call_operand.vmem [shape: f32[92,64], index: 7, kind: input, shape index: {}]   ;;  %s4490_s8 = inlined_call_operand.vmem [shape: f32[2,1,64], index: 8, kind: output, shape index: {}]  }
   0x1 LB: > { %s2752_s28 = sadd.s32 4294967295, %s3407_s27   ;;  %p2756_p0 = scmp.ge.s32.totalorder %s3407_s27, 1  ;;  %s3407_s27 = sphi %s3479_s27, %s18_s27  }
   0x2   : > { %p262_p1 = scmp.lt.s32.totalorder %s3407_s27, 3 }
   0x4   : > { %p263_p2 = pnand %p2756_p0, %p262_p1 }
   0x5   : > { %p294_p3 = scmp.lt.s32.totalorder (!%p263_p2), %s2752_s28, 1  ;;  %vm305_vm0 = vcmask (!%p263_p2), 550912   ;;  %s3409_s11 = smov (!%p263_p2), 109   ;;  %vm314_vm1 = vcmask (!%p263_p2), 239616   ;;  %v3413_v21 = vmov (!%p263_p2), 0.0|0.0   ;;  %v3418_v48 = vmov (!%p263_p2), 0.0  }
   0x6   : > { %266 = sbr.rel (%p263_p2) target bundleno = 3512 (0xdb8), region = 52  ;;  %s3410_s12 = smov (!%p263_p2), 126   ;;  %3022 = vmatprep.subr.bf16.mxu1 (!%p263_p2), %v3413_v21  ;;  %607 = vmatprep.mubr.f32.mxu0 (!%p263_p2), %v3418_v48  ;;  %vm3419_vm2 = vmmov (!%p263_p2), 0   ;;  %v523_v49 = vld [vmem:[%s4484_s2] sm:$0xff] (!%p263_p2)  ;;  %v3420_v50 = vmov (!%p263_p2), 0   ;;  %vm362_vm3 = vcmask (!%p263_p2), 244742  }
   0x7   : > { %s3411_s13 = smov (!%p263_p2), 127   ;;  %s3412_s14 = smov (!%p263_p2), 110   ;;  %2917 = vmatprep.mubr.msk.f32.mxu1 (!%p263_p2), %vm3419_vm2, %v3418_v48  ;;  %3379 = vset.pattern.permute.xlu0 (!%p263_p2), %v3420_v50  ;;  %vm366_vm4 = vcmask (!%p263_p2), 237568   ;;  %vm338_vm5 = vcmask (!%p263_p2), 242691   ;;  %vm390_vm6 = vcmask (!%p263_p2), 240641   ;;  %vm404_vm7 = vcmask (!%p263_p2), 891904  }
   0x8   : > { %s3414_s15 = smov (!%p263_p2), 108   ;;  %s3415_s16 = smov (!%p263_p2), 92   ;;  %3390 = vset.pattern.permute.xlu1 (!%p263_p2), %v3420_v50  ;;  %vm412_vm8 = vcmask (!%p263_p2), 243716   ;;  %vm330_vm9 = vcmask (!%p263_p2), 1039360   ;;  %vm436_vm10 = vcmask (!%p263_p2), 244743   ;;  %vm440_vm11 = vcmask (!%p263_p2), 238592  }
   0x9   : > { %s3416_s17 = smov (!%p263_p2), 91   ;;  %s3417_s18 = smov (!%p263_p2), 90   ;;  %vm382_vm12 = vcmask (!%p263_p2), 900096   ;;  %vm428_vm13 = vcmask (!%p263_p2), 883712   ;;  %vm354_vm14 = vcmask (!%p263_p2), 1031168   ;;  %vm456_vm15 = vcmask (!%p263_p2), 752640  }
   0xa   : > { %v746_v50 = vld [vmem:[%s4485_s3 + $0x1d8] sm:$0xff] (!%p263_p2)  ;;  %s3424_s30 = smov (!%p263_p2), 116   ;;  %s3425_s9 = smov (!%p263_p2), 106  }
   0xb   : > { %s3429_s25 = smov (!%p263_p2), 80   ;;  %s3430_s26 = smov (!%p263_p2), 102  }
   0xd   : > { %s4498_s28 = smov (!%p294_p3, %s2752_s28), 1 }
   0xe   : > { %s3345_s29 = smul.u32 12, %s4498_s28 }
  0x10   : > { %s298_s10 = scalar_lea.vmem %s4482_s0, %s3345_s29  ;;  %s3423_s29 = smov 118  }
  0x11   : > { %v302_v0 = vld [vmem:[%s298_s10] sm:$0x77]  ;;  %v303_v1 = vld [vmem:[%s298_s10 + $0x8] sm:$0x7]  ;;  %s3426_s10 = smov 107  }
  0x12   : > { %304 = vst [vmem:[#allocation2] sm:$0x77] %v302_v0  ;;  %306 = vst.msk [vmem:[#allocation2 + $0x8] sm:$0x7] %vm305_vm0, %v303_v1  ;;  %vm464_vm0 = vcmask 241666  }
  0x19   : > { %v392_v2 = vld [vmem:[#allocation2] sm:$0x77]  ;;  %v341_v3 = vld [vmem:[#allocation2 + $0x8] sm:$0x7] }
  0x1a   : > { %v317_v4 = vld [vmem:[#allocation2 + $0x8] sm:$0x7]  ;;  %400 = vrot.lane.b32.xlu0 %v392_v2, %s3409_s11  ;;  %v347_v5 = vrot.slane %v341_v3, 2  ;;  %v316_v8 = vld [vmem:[#allocation2] sm:$0x77]  ;;  %v396_v32 = vcombine.low %v392_v2, %v392_v2 }
  0x1b   : > { %v323_v6 = vrot.slane %v317_v4, 5  ;;  %v369_v7 = vld [vmem:[#allocation2 + $0x8] sm:$0x7]  ;;  %v321_v10 = vrot.slane %v316_v8, 5  ;;  %v320_v11 = vcombine.high %v316_v8, %v316_v8  ;;  %v368_v12 = vld [vmem:[#allocation2] sm:$0x77] }
  0x1c   : > { %352 = vrot.lane.b32.xlu1 %v347_v5, %s3410_s12  ;;  %v375_v9 = vrot.slane %v369_v7, 7  ;;  %v3392_v13 = vld [vmem:[#allocation2 + $0x8] ss:$0 sps:$4 sm:$0x77]   ;;  %v372_v16 = vcombine.high %v368_v12, %v368_v12  ;;  %v414_v18 = vld [vmem:[#allocation2] sm:$0x77] }
  0x1d   : > { %v415_v14 = vld [vmem:[#allocation2 + $0x8] sm:$0x7]  ;;  %v322_v15 = vrot.slane %v320_v11, 5  ;;  %v307_v19 = vld [vmem:[#allocation2] sm:$0x77]  ;;  %v418_v25 = vcombine.high %v414_v18, %v414_v18  ;;  %v373_v31 = vrot.slane %v368_v12, 7 }
  0x1e   : > { %328 = vrot.lane.b32.xlu0 %v323_v6, %s3411_s13  ;;  %v308_v17 = vld [vmem:[#allocation2 + $0x8] sm:$0x7]  ;;  %v421_v20 = vrot.slane %v415_v14, 1  ;;  %v310_v22 = vcombine.high %v307_v19, %v307_v19  ;;  %312 = vst [vmem:[#allocation8] sm:$0x7] %v307_v19  ;;  %v374_v24 = vrot.slane %v372_v16, 7 }
  0x1f   : > { %315 = vst.msk [vmem:[#allocation8 + $0x10] sm:$0x7] %vm314_vm1, %v308_v17  ;;  %v340_v23 = vld [vmem:[#allocation2] sm:$0x77]  ;;  %v420_v28 = vrot.slane %v418_v25, 1  ;;  %v419_v35 = vrot.slane %v414_v18, 1 }
  0x20   : > { %380 = vrot.lane.b32.xlu1 %v375_v9, %s3412_s14  ;;  %313 = vst [vmem:[#allocation8 + $0x8] sm:$0x7] %v310_v22  ;;  %v345_v26 = vrot.slane %v340_v23, 2  ;;  %v344_v27 = vcombine.high %v340_v23, %v340_v23  ;;  %v442_v30 = vld [vmem:[#allocation2] sm:$0x77] }
  0x21   : > { %v446_v33 = vcombine.high %v442_v30, %v442_v30  ;;  %v466_v34 = vld [vmem:[#allocation2] sm:$0x77]  ;;  %v443_v36 = vld [vmem:[#allocation2 + $0x8] sm:$0x7]  ;;  %v447_v46 = vrot.slane %v442_v30, 6 }
  0x22   : > { %324 = vrot.lane.b32.xlu0 %v321_v10, %s3411_s13  ;;  %v346_v29 = vrot.slane %v344_v27, 2  ;;  %v470_v38 = vcombine.high %v466_v34, %v466_v34  ;;  %v449_v39 = vrot.slane %v443_v36, 6  ;;  %v467_v40 = vld [vmem:[#allocation2 + $0x8] sm:$0x7]  ;;  %v490_v42 = vld [vmem:[#allocation2] sm:$0x77] }
  0x23   : > { %v448_v37 = vrot.slane %v446_v33, 6  ;;  %v473_v43 = vrot.slane %v467_v40, 3  ;;  %v494_v44 = vcombine.high %v490_v42, %v490_v42  ;;  %v491_v45 = vld [vmem:[#allocation2 + $0x8] sm:$0x7]  ;;  %v471_v47 = vrot.slane %v466_v34, 3  ;;  %v689_v40 = vld [vmem:[%s4485_s3 + $0x10] sm:$0xff] }
  0x24   : > { %402 = vrot.lane.b32.xlu1 %v3392_v13, %s3409_s11  ;;  %v472_v41 = vrot.slane %v470_v38, 3  ;;  %v740_v36 = vld [vmem:[%s4485_s3 + $0x1a8] sm:$0xff] }
  0x26   : > { %326 = vrot.lane.b32.xlu0 %v322_v15, %s3411_s13 }
  0x28   : > { %426 = vrot.lane.b32.xlu1 %v421_v20, %s3414_s15 }
  0x2a   : > { %378 = vrot.lane.b32.xlu0 %v374_v24, %s3412_s14 }
  0x2c   : > { %348 = vrot.lane.b32.xlu1 %v345_v26, %s3410_s12 }
  0x2e   : > { %424 = vrot.lane.b32.xlu0 %v420_v28, %s3414_s15 }
  0x30   : > { %350 = vrot.lane.b32.xlu1 %v346_v29, %s3410_s12 }
  0x32   : > { %376 = vrot.lane.b32.xlu0 %v373_v31, %s3412_s14 }
  0x34   : > { %398 = vrot.lane.b32.xlu1 %v396_v32, %s3409_s11 }
  0x36   : > { %422 = vrot.lane.b32.xlu0 %v419_v35, %s3414_s15  ;;  %v737_v35 = vld [vmem:[%s4485_s3 + $0x190] sm:$0xff] }
  0x38   : > { %452 = vrot.lane.b32.xlu1 %v448_v37, %s3415_s16 }
  0x3a   : > { %454 = vrot.lane.b32.xlu0 %v449_v39, %s3415_s16  ;;  %v1510_v39 = vld [vmem:[%s4486_s4 + $0xd8] sm:$0xff] }
  0x3c   : > { %476 = vrot.lane.b32.xlu1 %v472_v41, %s3416_s17  ;;  %v692_v41 = vld [vmem:[%s4485_s3 + $0x28] sm:$0xff] }
  0x3e   : > { %478 = vrot.lane.b32.xlu0 %v473_v43, %s3416_s17 }
  0x40   : > { %497 = vrot.lane.b32.xlu1 %v494_v44, %s3417_s18  ;;  %v3103_v44 = vpack.c.bf16 %v740_v36, %v737_v35  ;;  %v770_v35 = vld [vmem:[%s4485_s3 + $0x298] sm:$0xff] }
  0x42   : > { %499 = vrot.lane.b32.xlu0 %v491_v45, %s3417_s18  ;;  %v743_v45 = vld [vmem:[%s4485_s3 + $0x1c0] sm:$0xff] }
  0x44   : > { %450 = vrot.lane.b32.xlu1 %v447_v46, %s3415_s16 }
  0x46   : > { %474 = vrot.lane.b32.xlu0 %v471_v47, %s3416_s17 }
  0x48   : > { %495 = vrot.lane.b32.xlu1 %v490_v42, %s3417_s18 }
  0x4a   : > { %526 = vperm.xlu0 %3379, %v523_v49  }
  0x8c   : > { %v401_v51 = vpop.permute.xlu0 %400 }
  0x8e   : > { %v353_v52 = vpop.permute.xlu1 %352 }
  0x8f   : > { %363 = vst.msk [vmem:[#allocation8 + $0x10] sm:$0xc0] %vm362_vm3, %v353_v52  ;;  %vm480_vm3 = vcmask 744448  }
  0x90   : > { %367 = vst.msk [vmem:[#allocation8 + $0x28] sm:$0x1] %vm366_vm4, %v353_v52  ;;  %v329_v53 = vpop.permute.xlu0 %328  ;;  %vm488_vm4 = vcmask 244741  }
  0x91   : > { %339 = vst.msk [vmem:[#allocation8 + $0x10] sm:$0x38] %vm338_vm5, %v329_v53  ;;  %vm501_vm5 = vcmask 736256  }
  0x92   : > { %v381_v54 = vpop.permute.xlu1 %380 }
  0x93   : > { %391 = vst.msk [vmem:[#allocation8 + $0x28] sm:$0xe] %vm390_vm6, %v381_v54  ;;  %vm533_vm6 = vcmask 1042432  }
  0x94   : > { %v325_v55 = vpop.permute.xlu0 %324 }
  0x96   : > { %v403_v56 = vpop.permute.xlu1 %402 }
  0x97   : > { %v406_v57 = vsel %vm404_vm7, %v401_v51, %v403_v56  ;;  %413 = vst.msk [vmem:[#allocation8 + $0x28] sm:$0x70] %vm412_vm8, %v403_v56  ;;  %v3107_v56 = vpack.c.bf16 %v746_v50, %v743_v45  ;;  %v719_v45 = vld [vmem:[%s4485_s3 + $0x100] sm:$0xff] }
  0x98   : > { %411 = vst [vmem:[#allocation8 + $0x20] sm:$0x70] %v406_v57  ;;  %v327_v58 = vpop.permute.xlu0 %326  ;;  %v513_v4 = vld [vmem:[#allocation8 + $0x10] sm:$0xff]  ;;  %v695_v57 = vld [vmem:[%s4485_s3 + $0x40] sm:$0xff] }
  0x99   : > { %v331_v59 = vsel %vm330_vm9, %v325_v55, %v327_v58  ;;  %v332_v60 = vsel %vm330_vm9, %v327_v58, %v329_v53  ;;  %v688_v53 = vld [vmem:[%s4485_s3 + $0x8] sm:$0xff]  ;;  %v691_v55 = vld [vmem:[%s4485_s3 + $0x20] sm:$0xff]  ;;  %v698_v58 = vld [vmem:[%s4485_s3 + $0x58] sm:$0xff] }
  0x9a   : > { %336 = vst [vmem:[#allocation8] sm:$0x38] %v331_v59  ;;  %337 = vst [vmem:[#allocation8 + $0x8] sm:$0x38] %v332_v60  ;;  %v427_v61 = vpop.permute.xlu1 %426  ;;  %v749_v59 = vld [vmem:[%s4485_s3 + $0x1f0] sm:$0xff]  ;;  %v752_v60 = vld [vmem:[%s4485_s3 + $0x208] sm:$0xff] }
  0x9b   : > { %437 = vst.msk [vmem:[#allocation8 + $0x28] sm:$0x80] %vm436_vm10, %v427_v61  ;;  %vm529_vm10 = vcmask 220160  }
  0x9c   : > { %441 = vst.msk [vmem:[#allocation8 + $0x40] sm:$0x3] %vm440_vm11, %v427_v61  ;;  %v379_v62 = vpop.permute.xlu0 %378  ;;  %vm799_vm11 = vcmask 1045504  }
  0x9d   : > { %v384_v63 = vsel %vm382_vm12, %v379_v62, %v381_v54  ;;  %v3105_v54 = vpack.c.bf16 %v692_v41, %v689_v40  ;;  %v708_v40 = vld [vmem:[%s4485_s3 + $0xa8] sm:$0xff] }
  0x9e   : > { %389 = vst [vmem:[#allocation8 + $0x20] sm:$0xe] %v384_v63  ;;  %v349_v0 = vpop.permute.xlu1 %348  ;;  %v712_v41 = vld [vmem:[%s4485_s3 + $0xc8] sm:$0xff] }
  0xa0   : > { %v425_v1 = vpop.permute.xlu0 %424 }
  0xa1   : > { %v430_v2 = vsel %vm428_vm13, %v425_v1, %v427_v61  ;;  %v687_v61 = vld [vmem:[%s4485_s3] sm:$0xff] }
  0xa2   : > { %435 = vst [vmem:[#allocation8 + $0x38] ss:$-20 sps:$4 sm:$0x83] %v430_v2   ;;  %v351_v3 = vpop.permute.xlu1 %350  ;;  %v516_v5 = vld [vmem:[#allocation8 + $0x28] sm:$0xff]  ;;  %v694_v2 = vld [vmem:[%s4485_s3 + $0x38] sm:$0xff] }
  0xa3   : > { %v355_v6 = vsel %vm354_vm14, %v349_v0, %v351_v3  ;;  %v356_v7 = vsel %vm354_vm14, %v351_v3, %v353_v52  ;;  %v3023_v8 = vpack.c.bf16 %v516_v5, %v513_v4  ;;  %v510_v52 = vld [vmem:[%s4483_s1] sm:$0xff]  ;;  %v3109_v3 = vpack.c.bf16 %v698_v58, %v695_v57  ;;  %v697_v5 = vld [vmem:[%s4485_s3 + $0x50] sm:$0xff] }
  0xa4   : > { %360 = vst [vmem:[#allocation8 + $0x18] ss:$-20 sps:$4 sm:$0xc1] %v355_v6   ;;  %361 = vst [vmem:[#allocation8 + $0x20] ss:$-20 sps:$4 sm:$0xc1] %v356_v7   ;;  %v377_v9 = vpop.permute.xlu0 %376  ;;  %v3111_v6 = vpack.c.bf16 %v752_v60, %v749_v59 }
  0xa5   : > { %v383_v10 = vsel %vm382_vm12, %v377_v9, %v379_v62  ;;  %3024 = vmatpush3.bf16.msra.mxu1 %v3023_v8  ;;  %v690_v62 = vld [vmem:[%s4485_s3 + $0x18] sm:$0xff]  ;;  %v701_v7 = vld [vmem:[%s4485_s3 + $0x70] sm:$0xff]  ;;  %v704_v8 = vld [vmem:[%s4485_s3 + $0x88] sm:$0xff] }
  0xa6   : > { %388 = vst [vmem:[#allocation8 + $0x18] sm:$0xe] %v383_v10  ;;  %v399_v11 = vpop.permute.xlu1 %398  ;;  %3025 = vmatprep.subr.bf16.mxu1 %v3413_v21  ;;  %v755_v9 = vld [vmem:[%s4485_s3 + $0x220] sm:$0xff]  ;;  %v758_v10 = vld [vmem:[%s4485_s3 + $0x238] sm:$0xff]  ;;  %v725_v58 = vld [vmem:[%s4485_s3 + $0x130] sm:$0xff] }
  0xa7   : > { %v405_v12 = vsel %vm404_vm7, %v399_v11, %v401_v51  ;;  %v3031_v11 = vpack.c.bf16 %v690_v62, %v687_v61  ;;  %v728_v59 = vld [vmem:[%s4485_s3 + $0x148] sm:$0xff]  ;;  %v717_v62 = vld [vmem:[%s4485_s3 + $0xf0] sm:$0xff] }
  0xa8   : > { %410 = vst [vmem:[#allocation8 + $0x18] sm:$0x70] %v405_v12  ;;  %v423_v13 = vpop.permute.xlu0 %422  ;;  %v3033_v12 = vpack.c.bf16 %v697_v5, %v694_v2  ;;  %v727_v2 = vld [vmem:[%s4485_s3 + $0x140] sm:$0xff] }
  0xa9   : > { %v429_v14 = vsel %vm428_vm13, %v423_v13, %v425_v1  ;;  %v3029_v1 = vpack.c.bf16 %v691_v55, %v688_v53  ;;  %v693_v13 = vld [vmem:[%s4485_s3 + $0x30] sm:$0xff]  ;;  %v714_v53 = vld [vmem:[%s4485_s3 + $0xd8] sm:$0xff]  ;;  %v723_v5 = vld [vmem:[%s4485_s3 + $0x120] sm:$0xff] }
  0xaa   : > { %434 = vst [vmem:[#allocation8 + $0x30] ss:$-20 sps:$4 sm:$0x83] %v429_v14   ;;  %v453_v15 = vpop.permute.xlu1 %452  ;;  %v696_v14 = vld [vmem:[%s4485_s3 + $0x48] sm:$0xff] }
  0xab   : > { %v512_v16 = vld [vmem:[#allocation8 + $0x8] sm:$0xff]  ;;  %v515_v17 = vld [vmem:[#allocation8 + $0x20] sm:$0xff] }
  0xac   : > { %v455_v18 = vpop.permute.xlu0 %454  ;;  %v3012_v19 = vpack.c.bf16 %v515_v17, %v512_v16  ;;  %v511_v25 = vld [vmem:[#allocation8] sm:$0xff]  ;;  %v3113_v16 = vpack.c.bf16 %v704_v8, %v701_v7  ;;  %v730_v7 = vld [vmem:[%s4485_s3 + $0x158] sm:$0xff]  ;;  %v733_v8 = vld [vmem:[%s4485_s3 + $0x170] sm:$0xff] }
  0xad   : > { %v458_v20 = vsel %vm456_vm15, %v453_v15, %v455_v18  ;;  %465 = vst.msk [vmem:[#allocation8 + $0x40] sm:$0x1c] %vm464_vm0, %v455_v18  ;;  %v703_v17 = vld [vmem:[%s4485_s3 + $0x80] sm:$0xff]  ;;  %v3115_v18 = vpack.c.bf16 %v758_v10, %v755_v9  ;;  %v3057_v10 = vpack.c.bf16 %v733_v8, %v730_v7  ;;  %v784_v7 = vld [vmem:[%s4485_s3 + $0x308] sm:$0xff] }
  0xae   : > { %463 = vst [vmem:[#allocation8 + $0x38] sm:$0x1c] %v458_v20  ;;  %v477_v22 = vpop.permute.xlu1 %476  ;;  %3013 = vmatprep.subr.bf16.mxu0 %v3012_v19  ;;  %v707_v19 = vld [vmem:[%s4485_s3 + $0xa0] sm:$0xff]  ;;  %v710_v20 = vld [vmem:[%s4485_s3 + $0xb8] sm:$0xff] }
  0xaf   : > { %v787_v8 = vld [vmem:[%s4485_s3 + $0x320] sm:$0xff] }
  0xb0   : > { %v479_v23 = vpop.permute.xlu0 %478 }
  0xb1   : > { %v482_v24 = vsel %vm480_vm3, %v477_v22, %v479_v23  ;;  %489 = vst.msk [vmem:[#allocation8 + $0x40] sm:$0xe0] %vm488_vm4, %v479_v23  ;;  %v514_v26 = vld [vmem:[#allocation8 + $0x18] sm:$0xff]  ;;  %v764_v23 = vld [vmem:[%s4485_s3 + $0x268] sm:$0xff]  ;;  %vm795_vm4 = vcmask 244736  }
  0xb2   : > { %487 = vst [vmem:[#allocation8 + $0x38] sm:$0xe0] %v482_v24  ;;  %v498_v27 = vpop.permute.xlu1 %497  ;;  %v3014_v28 = vpack.c.bf16 %v514_v26, %v511_v25  ;;  %v3035_v24 = vpack.c.bf16 %v696_v14, %v693_v13  ;;  %v699_v26 = vld [vmem:[%s4485_s3 + $0x60] sm:$0xff]  ;;  %v736_v13 = vld [vmem:[%s4485_s3 + $0x188] sm:$0xff] }
  0xb3   : > { %v739_v14 = vld [vmem:[%s4485_s3 + $0x1a0] sm:$0xff] }
  0xb4   : > { %v500_v29 = vpop.permute.xlu0 %499  ;;  %3015 = vmatpush1.bf16.msra.mxu0 %v3014_v28  ;;  %v706_v28 = vld [vmem:[%s4485_s3 + $0x98] sm:$0xff] }
  0xb5   : > { %v503_v30 = vsel %vm501_vm5, %v498_v27, %v500_v29  ;;  %509 = vst.msk [vmem:[#allocation8 + $0x58] sm:$0x7] %vm314_vm1, %v500_v29  ;;  %vm3421_vm1 = vmmov 1   ;;  %v3117_v29 = vpack.c.bf16 %v710_v20, %v707_v19  ;;  %v742_v19 = vld [vmem:[%s4485_s3 + $0x1b8] sm:$0xff]  ;;  %v745_v20 = vld [vmem:[%s4485_s3 + $0x1d0] sm:$0xff] }
  0xb6   : > { %508 = vst [vmem:[#allocation8 + $0x50] sm:$0x7] %v503_v30  ;;  %v451_v31 = vpop.permute.xlu1 %450  ;;  %vm3550_vm8 = vmpackc.low %vm533_vm6, %vm3421_vm1  ;;  %v709_v30 = vld [vmem:[%s4485_s3 + $0xb0] sm:$0xff]  ;;  %vm1093_vm6 = vcmask 556032  }
  0xb7   : > { %v457_v32 = vsel %vm456_vm15, %v451_v31, %v453_v15  ;;  %v700_v15 = vld [vmem:[%s4485_s3 + $0x68] sm:$0xff]  ;;  %vm3885_vm0 = vmpackc.low %vm799_vm11, %vm3421_vm1  ;;  %vm2703_vm11 = vcmask 516096  }
  0xb8   : > { %462 = vst [vmem:[#allocation8 + $0x30] sm:$0x1c] %v457_v32  ;;  %v475_v33 = vpop.permute.xlu0 %474  ;;  %v519_v42 = vld [vmem:[#allocation8 + $0x40] sm:$0xff]  ;;  %v3037_v25 = vpack.c.bf16 %v703_v17, %v700_v15  ;;  %v713_v32 = vld [vmem:[%s4485_s3 + $0xd0] sm:$0xff] }
  0xb9   : > { %v481_v34 = vsel %vm480_vm3, %v475_v33, %v477_v22  ;;  %v518_v47 = vld [vmem:[#allocation8 + $0x38] sm:$0xff]  ;;  %v761_v22 = vld [vmem:[%s4485_s3 + $0x250] sm:$0xff]  ;;  %v716_v33 = vld [vmem:[%s4485_s3 + $0xe8] sm:$0xff] }
  0xba   : > { %486 = vst [vmem:[#allocation8 + $0x30] sm:$0xe0] %v481_v34  ;;  %v496_v37 = vpop.permute.xlu1 %495  ;;  %v3119_v31 = vpack.c.bf16 %v764_v23, %v761_v22  ;;  %v767_v34 = vld [vmem:[%s4485_s3 + $0x280] sm:$0xff]  ;;  %v3065_v23 = vpack.c.bf16 %v745_v20, %v742_v19  ;;  %v786_v19 = vld [vmem:[%s4485_s3 + $0x318] sm:$0xff] }
  0xbb   : > { %v502_v38 = vsel %vm501_vm5, %v496_v37, %v498_v27  ;;  %v702_v27 = vld [vmem:[%s4485_s3 + $0x78] sm:$0xff]  ;;  %v3041_v37 = vpack.c.bf16 %v709_v30, %v706_v28  ;;  %v735_v17 = vld [vmem:[%s4485_s3 + $0x180] sm:$0xff] }
  0xbc   : > { %507 = vst [vmem:[#allocation8 + $0x48] sm:$0x7] %v502_v38  ;;  %v522_v43 = vld [vmem:[#allocation8 + $0x58] sm:$0x7]  ;;  %v3039_v36 = vpack.c.bf16 %v702_v27, %v699_v26  ;;  %v705_v38 = vld [vmem:[%s4485_s3 + $0x90] sm:$0xff]  ;;  %v748_v26 = vld [vmem:[%s4485_s3 + $0x1e8] sm:$0xff] }
  0xbd   : > { %v3026_v46 = vpack.c.bf16 %v522_v43, %v519_v42  ;;  %v521_v49 = vld [vmem:[#allocation8 + $0x50] sm:$0x7]  ;;  %v3121_v42 = vpack.c.bf16 %v716_v33, %v713_v32  ;;  %v715_v43 = vld [vmem:[%s4485_s3 + $0xe0] sm:$0xff]  ;;  %v3043_v50 = vpack.c.bf16 %v708_v40, %v705_v38  ;;  %v754_v32 = vld [vmem:[%s4485_s3 + $0x218] sm:$0xff] }
  0xbe   : > { %v3016_v51 = vpack.c.bf16 %v521_v49, %v518_v47  ;;  %v773_v47 = vld [vmem:[%s4485_s3 + $0x2b0] sm:$0xff]  ;;  %v776_v49 = vld [vmem:[%s4485_s3 + $0x2c8] sm:$0xff]  ;;  %v751_v27 = vld [vmem:[%s4485_s3 + $0x200] sm:$0xff] }
  0xbf   : > { %3028 = vmatpush3.bf16.msk.msra.mxu1 %vm3550_vm8, %v3026_v46  ;;  %v722_v46 = vld [vmem:[%s4485_s3 + $0x118] sm:$0xff]  ;;  %v3127_v57 = vpack.c.bf16 %v776_v49, %v773_v47  ;;  %v747_v30 = vld [vmem:[%s4485_s3 + $0x1e0] sm:$0xff]  ;;  %v757_v33 = vld [vmem:[%s4485_s3 + $0x230] sm:$0xff] }
  0xc0   : > { %3018 = vmatprep.subr.msk.bf16.mxu0 %vm3550_vm8, %v3016_v51  ;;  %3104 = vmatprep.subr.bf16.mxu1 %v3103_v44  ;;  %v3123_v44 = vpack.c.bf16 %v770_v35, %v767_v34  ;;  %v3045_v51 = vpack.c.bf16 %v715_v43, %v712_v41  ;;  %v3125_v55 = vpack.c.bf16 %v722_v46, %v719_v45  ;;  %v760_v38 = vld [vmem:[%s4485_s3 + $0x248] sm:$0xff]  ;;  %v763_v40 = vld [vmem:[%s4485_s3 + $0x260] sm:$0xff]  ;;  %v766_v45 = vld [vmem:[%s4485_s3 + $0x278] sm:$0xff] }
  0xc1   : > { %v517_v63 = vld [vmem:[#allocation8 + $0x30] sm:$0xff]  ;;  %v3073_v35 = vpack.c.bf16 %v757_v33, %v754_v32  ;;  %v759_v43 = vld [vmem:[%s4485_s3 + $0x240] sm:$0xff]  ;;  %v792_v32 = vld [vmem:[%s4485_s3 + $0x348] sm:$0x3f] }
  0xc2   : > { %2918 = vmatmul.mubr.msk.f32.vlgmr.msra.gmra.mrb[0].mxu1 %vm529_vm10, %v510_v52  ;;  %v769_v46 = vld [vmem:[%s4485_s3 + $0x290] sm:$0xff] }
  0xc3   : > { %v520_v0 = vld [vmem:[#allocation8 + $0x48] sm:$0x7]  ;;  %3106 = vmatpush3.bf16.msra.mxu1 %v3105_v54  ;;  %v718_v54 = vld [vmem:[%s4485_s3 + $0xf8] sm:$0xff]  ;;  %v3081_v49 = vpack.c.bf16 %v769_v46, %v766_v45 }
  0xc4   : > { %v3019_v4 = vpack.c.bf16 %v520_v0, %v517_v63  ;;  %3108 = vmatprep.subr.bf16.mxu1 %v3107_v56  ;;  %v721_v56 = vld [vmem:[%s4485_s3 + $0x110] sm:$0xff]  ;;  %v720_v63 = vld [vmem:[%s4485_s3 + $0x108] sm:$0xff]  ;;  %v3129_v0 = vpack.c.bf16 %v728_v59, %v725_v58  ;;  %v779_v59 = vld [vmem:[%s4485_s3 + $0x2e0] sm:$0xff] }
  0xc5   : > { %v3049_v61 = vpack.c.bf16 %v721_v56, %v718_v54  ;;  %v771_v56 = vld [vmem:[%s4485_s3 + $0x2a0] sm:$0xff] }
  0xc6   : > { %3021 = vmatpush1.bf16.msk.msra.mxu0 %vm3550_vm8, %v3019_v4 }
  0xc7   : > { %3030 = vmatprep.subr.bf16.mxu0 %v3029_v1  ;;  %3110 = vmatpush3.bf16.msra.mxu1 %v3109_v3  ;;  %v724_v1 = vld [vmem:[%s4485_s3 + $0x128] sm:$0xff]  ;;  %v3051_v3 = vpack.c.bf16 %v720_v63, %v717_v62  ;;  %v778_v62 = vld [vmem:[%s4485_s3 + $0x2d8] sm:$0xff]  ;;  %v781_v63 = vld [vmem:[%s4485_s3 + $0x2f0] sm:$0xff] }
  0xc8   : > { %3112 = vmatprep.subr.bf16.mxu1 %v3111_v6  ;;  %v3053_v4 = vpack.c.bf16 %v727_v2, %v724_v1  ;;  %v726_v6 = vld [vmem:[%s4485_s3 + $0x138] sm:$0xff]  ;;  %v3089_v1 = vpack.c.bf16 %v781_v63, %v778_v62 }
  0xc9   : > { %2760 = vmatmul.mubr.msk.f32.vlgmr.msra.gmra.mrb[0].mxu0 %vm529_vm10, %v510_v52  ;;  %v711_v52 = vld [vmem:[%s4485_s3 + $0xc0] sm:$0xff]  ;;  %v3055_v9 = vpack.c.bf16 %v726_v6, %v723_v5  ;;  %v734_v2 = vld [vmem:[%s4485_s3 + $0x178] sm:$0xff] }
  0xca   : > { %3032 = vmatpush1.bf16.msra.mxu0 %v3031_v11  ;;  %v3047_v60 = vpack.c.bf16 %v714_v53, %v711_v52  ;;  %v729_v11 = vld [vmem:[%s4485_s3 + $0x150] sm:$0xff]  ;;  %v772_v52 = vld [vmem:[%s4485_s3 + $0x2a8] sm:$0xff]  ;;  %v775_v53 = vld [vmem:[%s4485_s3 + $0x2c0] sm:$0xff] }
  0xcb   : > { %3034 = vmatprep.subr.bf16.mxu0 %v3033_v12  ;;  %3114 = vmatpush3.bf16.msra.mxu1 %v3113_v16  ;;  %v732_v12 = vld [vmem:[%s4485_s3 + $0x168] sm:$0xff]  ;;  %v3061_v16 = vpack.c.bf16 %v739_v14, %v736_v13  ;;  %v785_v14 = vld [vmem:[%s4485_s3 + $0x310] sm:$0xff] }
  0xcc   : > { %3116 = vmatprep.subr.bf16.mxu1 %v3115_v18  ;;  %v3059_v15 = vpack.c.bf16 %v732_v12, %v729_v11  ;;  %v738_v18 = vld [vmem:[%s4485_s3 + $0x198] sm:$0xff]  ;;  %v527_v12 = vpop.permute.xlu0 %526 }
  0xcd   : > { %v3063_v22 = vpack.c.bf16 %v738_v18, %v735_v17  ;;  %v788_v17 = vld [vmem:[%s4485_s3 + $0x328] sm:$0xff]  ;;  %v783_v18 = vld [vmem:[%s4485_s3 + $0x300] sm:$0xff] }
  0xce   : > { %3036 = vmatpush1.bf16.msra.mxu0 %v3035_v24  ;;  %v741_v24 = vld [vmem:[%s4485_s3 + $0x1b0] sm:$0xff] }
  0xcf   : > { %3038 = vmatprep.subr.bf16.mxu0 %v3037_v25  ;;  %3118 = vmatpush3.bf16.msra.mxu1 %v3117_v29  ;;  %v744_v25 = vld [vmem:[%s4485_s3 + $0x1c8] sm:$0xff]  ;;  %v3069_v29 = vpack.c.bf16 %v751_v27, %v748_v26  ;;  %v3095_v26 = vpack.c.bf16 %v786_v19, %v783_v18  ;;  %v791_v27 = vld [vmem:[%s4485_s3 + $0x340] sm:$0xff] }
  0xd0   : > { %3120 = vmatprep.subr.bf16.mxu1 %v3119_v31  ;;  %v3067_v28 = vpack.c.bf16 %v744_v25, %v741_v24  ;;  %v750_v31 = vld [vmem:[%s4485_s3 + $0x1f8] sm:$0xff]  ;;  %v3136_v25 = vpack.c.bf16 %v788_v17, %v785_v14 }
  0xd1   : > { %v3071_v34 = vpack.c.bf16 %v750_v31, %v747_v30  ;;  %v794_v30 = vld [vmem:[%s4485_s3 + $0x358] sm:$0x3f]  ;;  %v789_v31 = vld [vmem:[%s4485_s3 + $0x330] sm:$0xff] }
  0xd2   : > { %3040 = vmatpush1.bf16.msra.mxu0 %v3039_v36  ;;  %v753_v36 = vld [vmem:[%s4485_s3 + $0x210] sm:$0xff] }
  0xd3   : > { %3042 = vmatprep.subr.bf16.mxu0 %v3041_v37  ;;  %3122 = vmatpush3.bf16.msra.mxu1 %v3121_v42  ;;  %v756_v37 = vld [vmem:[%s4485_s3 + $0x228] sm:$0xff]  ;;  %v3077_v42 = vpack.c.bf16 %v763_v40, %v760_v38 }
  0xd4   : > { %3124 = vmatprep.subr.bf16.mxu1 %v3123_v44  ;;  %v3075_v41 = vpack.c.bf16 %v756_v37, %v753_v36  ;;  %v762_v44 = vld [vmem:[%s4485_s3 + $0x258] sm:$0xff] }
  0xd5   : > { %v3079_v47 = vpack.c.bf16 %v762_v44, %v759_v43 }
  0xd6   : > { %3044 = vmatpush1.bf16.msra.mxu0 %v3043_v50  ;;  %v765_v50 = vld [vmem:[%s4485_s3 + $0x270] sm:$0xff] }
  0xd7   : > { %3046 = vmatprep.subr.bf16.mxu0 %v3045_v51  ;;  %3126 = vmatpush3.bf16.msra.mxu1 %v3125_v55  ;;  %v768_v51 = vld [vmem:[%s4485_s3 + $0x288] sm:$0xff]  ;;  %v3085_v55 = vpack.c.bf16 %v775_v53, %v772_v52 }
  0xd8   : > { %3128 = vmatprep.subr.bf16.mxu1 %v3127_v57  ;;  %v3083_v54 = vpack.c.bf16 %v768_v51, %v765_v50  ;;  %v774_v57 = vld [vmem:[%s4485_s3 + $0x2b8] sm:$0xff] }
  0xd9   : > { %v3087_v58 = vpack.c.bf16 %v774_v57, %v771_v56 }
  0xda   : > { %3048 = vmatpush1.bf16.msra.mxu0 %v3047_v60  ;;  %v782_v60 = vld [vmem:[%s4485_s3 + $0x2f8] sm:$0xff] }
  0xdb   : > { %3050 = vmatprep.subr.bf16.mxu0 %v3049_v61  ;;  %3130 = vmatpush3.bf16.msra.mxu1 %v3129_v0  ;;  %v3131_v61 = vpack.c.bf16 %v782_v60, %v779_v59  ;;  %v731_v0 = vld [vmem:[%s4485_s3 + $0x160] sm:$0xff] }
  0xdc   : > { %v3133_v5 = vpack.c.bf16 %v734_v2, %v731_v0 }
  0xdd   : > { %3132 = vmatprep.subr.bf16.mxu1 %v3131_v61 }
  0xde   : > { %3052 = vmatpush1.bf16.msra.mxu0 %v3051_v3  ;;  %v777_v3 = vld [vmem:[%s4485_s3 + $0x2d0] sm:$0xff] }
  0xdf   : > { %3054 = vmatprep.subr.bf16.mxu0 %v3053_v4  ;;  %v780_v4 = vld [vmem:[%s4485_s3 + $0x2e8] sm:$0xff]  ;;  %3134 = vmatpush3.bf16.msra.mxu1 %v3133_v5 }
  0xe0   : > { %v3091_v6 = vpack.c.bf16 %v780_v4, %v777_v3  ;;  %3135 = vmatprep.subr.bf16.mxu1 %v3413_v21 }
  0xe2   : > { %3056 = vmatpush1.bf16.msra.mxu0 %v3055_v9  ;;  %v3093_v9 = vpack.c.bf16 %v787_v8, %v784_v7 }
  0xe3   : > { %3058 = vmatprep.subr.bf16.mxu0 %v3057_v10 }
  0xe6   : > { %3060 = vmatpush1.bf16.msra.mxu0 %v3059_v15 }
  0xe7   : > { %3062 = vmatprep.subr.bf16.mxu0 %v3061_v16 }
  0xea   : > { %3064 = vmatpush1.bf16.msra.mxu0 %v3063_v22  ;;  %v790_v22 = vld [vmem:[%s4485_s3 + $0x338] sm:$0xff] }
  0xeb   : > { %3066 = vmatprep.subr.bf16.mxu0 %v3065_v23  ;;  %v793_v23 = vld [vmem:[%s4485_s3 + $0x350] sm:$0x3f] }
  0xee   : > { %3068 = vmatpush1.bf16.msra.mxu0 %v3067_v28 }
  0xef   : > { %3070 = vmatprep.subr.bf16.mxu0 %v3069_v29  ;;  %v3097_v29 = vpack.c.bf16 %v793_v23, %v790_v22 }
  0xf2   : > { %3072 = vmatpush1.bf16.msra.mxu0 %v3071_v34  ;;  %v3139_v34 = vpack.c.bf16 %v794_v30, %v791_v27 }
  0xf3   : > { %3074 = vmatprep.subr.bf16.mxu0 %v3073_v35  ;;  %v3100_v35 = vpack.c.bf16 %v792_v32, %v789_v31 }
  0xf6   : > { %3076 = vmatpush1.bf16.msra.mxu0 %v3075_v41 }
  0xf7   : > { %3078 = vmatprep.subr.bf16.mxu0 %v3077_v42 }
  0xfa   : > { %3080 = vmatpush1.bf16.msra.mxu0 %v3079_v47 }
  0xfb   : > { %3082 = vmatprep.subr.bf16.mxu0 %v3081_v49  ;;  %v1289_v49 = vld [vmem:[%s4484_s2 + $0x8] sm:$0xff] }
  0xfe   : > { %3084 = vmatpush1.bf16.msra.mxu0 %v3083_v54 }
  0xff   : > { %3086 = vmatprep.subr.bf16.mxu0 %v3085_v55 }
 0x102   : > { %3088 = vmatpush1.bf16.msra.mxu0 %v3087_v58 }
 0x103   : > { %3090 = vmatprep.subr.bf16.mxu0 %v3089_v1 }
 0x106   : > { %3092 = vmatpush1.bf16.msra.mxu0 %v3091_v6 }
 0x107   : > { %3094 = vmatprep.subr.bf16.mxu0 %v3093_v9 }
 0x195   : > { %v680_v10 = vpop.f32.mrb[0].mxu1 }
 0x196   : > { %v2919_v11 = vpop.f32.mrb[1].mxu1  ;;  %v681_v36 = vadd.f32 %v680_v10, %v527_v12 }
 0x198   : > { %v686_v37 = vmax.f32 %v681_v36, 0.0  ;;  %v1261_v36 = vld [vmem:[%s4483_s1 + $0x10] sm:$0xff] }
 0x19c   : > { %v609_v13 = vpop.f32.mrb[0].mxu0 }
 0x19d   : > { %v610_v15 = vadd.f32 %v609_v13, %v527_v12  ;;  %v611_v16 = vpop.f32.mrb[1].mxu0 }
 0x19e   : > { %v612_v20 = vadd.f32 %v611_v16, %v527_v12 }
 0x19f   : > { %v684_v28 = vmax.f32 %v610_v15, 0.0 }
 0x1a0   : > { %v685_v24 = vmax.f32 %v612_v20, 0.0 }
 0x1a2   : > { %873 = vmatprep.mubr.f32.mxu0 %v685_v24  ;;  %1015 = vmatprep.mubr.f32.mxu1 %v685_v24 }
 0x1a3   : > { %874 = vmatmul.mubr.f32.vlgmr.msra.gmra.mrb[2].mxu0 %v684_v28  ;;  %1016 = vmatmul.mubr.f32.vlgmr.msra.gmra.mrb[2].mxu1 %v684_v28 }
 0x1a4   : > { %3137 = vmatpush3.bf16.msra.mxu1 %v3136_v25  ;;  %3096 = vmatpush1.bf16.msra.mxu0 %v3095_v26 }
 0x1a5   : > { %3138 = vmatprep.subr.bf16.mxu1 %v3413_v21  ;;  %3099 = vmatprep.subr.msk.bf16.mxu0 %vm3885_vm0, %v3097_v29 }
 0x1a6   : > { %2928 = vmatprep.mubr.msk.f32.mxu1 %vm3419_vm2, %v3418_v48  ;;  %944 = vmatprep.mubr.f32.mxu0 %v3418_v48 }
 0x1a8   : > { %3141 = vmatpush3.bf16.msk.msra.mxu1 %vm3885_vm0, %v3139_v34  ;;  %3102 = vmatpush1.bf16.msk.msra.mxu0 %vm3885_vm0, %v3100_v35 }
 0x1ab   : > { %2929 = vmatmul.mubr.msk.f32.vlgmr.msra.gmra.mrb[4].mxu1 %vm795_vm4, %v686_v37  ;;  %2765 = vmatmul.mubr.msk.f32.vlgmr.msra.gmra.mrb[2].mxu0 %vm795_vm4, %v686_v37 }
 0x1ac   : > { %1363 = vmatprep.mubr.f32.mxu1 %v3418_v48 }
 0x276   : > { %v2827_v38 = vpop.f32.mrb[2].mxu1 }
 0x277   : > { %v2828_v40 = vpop.f32.mrb[3].mxu1 }
 0x278   : > { %v2829_v41 = vadd.f32 %v2828_v40, %v2827_v38 }
 0x27e   : > { %v1087_v42 = vpop.f32.mrb[4].mxu1  ;;  %v946_v43 = vpop.f32.mrb[2].mxu0 }
 0x27f   : > { %v1088_v44 = vadd.f32 %v2829_v41, %v1087_v42  ;;  %1098 = vst [vmem:[#allocation8] sm:$0xff] %v946_v43  ;;  %v2930_v45 = vpop.f32.mrb[5].mxu1  ;;  %v948_v46 = vpop.f32.mrb[3].mxu0  ;;  %1127 = vrot.lane.b32.xlu1 %v946_v43, %s3410_s12  ;;  %1107 = vrot.lane.b32.xlu0 %v946_v43, %s3411_s13 }
 0x280   : > { %1099 = vst [vmem:[#allocation8 + $0x8] sm:$0xff] %v948_v46 }
 0x281   : > { %1094 = vst.msk [vmem:[#allocation3 + $0x10] sm:$0xff] %vm1093_vm6, %v1088_v44 }
 0x283   : > { %1167 = vrot.lane.b32.xlu1 %v946_v43, %s3409_s11  ;;  %1147 = vrot.lane.b32.xlu0 %v946_v43, %s3412_s14 }
 0x287   : > { %1207 = vrot.lane.b32.xlu1 %v946_v43, %s3415_s16  ;;  %1187 = vrot.lane.b32.xlu0 %v946_v43, %s3414_s15 }
 0x288   : > { %v1097_v47 = vld [vmem:[#allocation3 + $0x10] sm:$0xff] }
 0x289   : > { %1100 = vst.msk [vmem:[#allocation8 + $0x10] sm:$0xff] %vm795_vm4, %v1097_v47 }
 0x28b   : > { %1131 = vrot.lane.b32.xlu0 %v1097_v47, %s3410_s12  ;;  %1109 = vrot.lane.b32.xlu1 %v948_v46, %s3411_s13 }
 0x28f   : > { %1151 = vrot.lane.b32.xlu0 %v1097_v47, %s3412_s14  ;;  %1111 = vrot.lane.b32.xlu1 %v1097_v47, %s3411_s13 }
 0x290   : > { %v1264_v38 = vld [vmem:[#allocation8 + $0x10] sm:$0xff] }
 0x293   : > { %1171 = vrot.lane.b32.xlu0 %v1097_v47, %s3409_s11  ;;  %1129 = vrot.lane.b32.xlu1 %v948_v46, %s3410_s12 }
 0x297   : > { %1191 = vrot.lane.b32.xlu0 %v1097_v47, %s3414_s15  ;;  %1149 = vrot.lane.b32.xlu1 %v948_v46, %s3412_s14 }
 0x29b   : > { %1211 = vrot.lane.b32.xlu0 %v1097_v47, %s3415_s16  ;;  %1169 = vrot.lane.b32.xlu1 %v948_v46, %s3409_s11 }
 0x29f   : > { %1231 = vrot.lane.b32.xlu0 %v1097_v47, %s3416_s17  ;;  %1189 = vrot.lane.b32.xlu1 %v948_v46, %s3414_s15 }
 0x2a3   : > { %1227 = vrot.lane.b32.xlu0 %v946_v43, %s3416_s17  ;;  %1209 = vrot.lane.b32.xlu1 %v948_v46, %s3415_s16 }
 0x2a7   : > { %1251 = vrot.lane.b32.xlu0 %v1097_v47, %s3417_s18  ;;  %1229 = vrot.lane.b32.xlu1 %v948_v46, %s3416_s17  ;;  %s3427_s17 = smov 124  }
 0x2ab   : > { %1292 = vperm.xlu0 %3379, %v1289_v49   ;;  %1249 = vrot.lane.b32.xlu1 %v948_v46, %s3417_s18 }
 0x2af   : > { %1247 = vrot.lane.b32.xlu1 %v946_v43, %s3417_s18  ;;  %s3428_s18 = smov 104  }
 0x2f1   : > { %v1128_v50 = vpop.permute.xlu1 %1127  ;;  %v1108_v51 = vpop.permute.xlu0 %1107 }
 0x2f5   : > { %v1168_v52 = vpop.permute.xlu1 %1167  ;;  %v1148_v53 = vpop.permute.xlu0 %1147 }
 0x2f9   : > { %v1208_v54 = vpop.permute.xlu1 %1207  ;;  %v1188_v55 = vpop.permute.xlu0 %1187 }
 0x2fd   : > { %v1132_v56 = vpop.permute.xlu0 %1131  ;;  %v1110_v57 = vpop.permute.xlu1 %1109 }
 0x2fe   : > { %1140 = vst.msk [vmem:[#allocation8 + $0x40] sm:$0xff] %vm795_vm4, %v1132_v56  ;;  %v1113_v58 = vsel %vm330_vm9, %v1108_v51, %v1110_v57 }
 0x2ff   : > { %1118 = vst [vmem:[#allocation8 + $0x18] sm:$0xff] %v1113_v58  ;;  %v3144_v63 = vpack.c.bf16 %v1113_v58, %v946_v43 }
 0x301   : > { %v1152_v59 = vpop.permute.xlu0 %1151  ;;  %v1112_v60 = vpop.permute.xlu1 %1111 }
 0x302   : > { %1160 = vst.msk [vmem:[#allocation8 + $0x58] sm:$0xff] %vm795_vm4, %v1152_v59  ;;  %v1114_v61 = vsel %vm330_vm9, %v1110_v57, %v1112_v60  ;;  %1120 = vst.msk [vmem:[#allocation8 + $0x28] sm:$0xff] %vm795_vm4, %v1112_v60 }
 0x303   : > { %1119 = vst [vmem:[#allocation8 + $0x20] sm:$0xff] %v1114_v61  ;;  %v3142_v62 = vpack.c.bf16 %v1114_v61, %v948_v46 }
 0x305   : > { %v1172_v0 = vpop.permute.xlu0 %1171  ;;  %v1130_v1 = vpop.permute.xlu1 %1129  ;;  %3143 = vmatprep.subr.bf16.mxu1 %v3142_v62  ;;  %v1270_v42 = vld [vmem:[#allocation8 + $0x40] sm:$0xff] }
 0x306   : > { %1180 = vst.msk [vmem:[#allocation8 + $0x70] sm:$0xff] %vm795_vm4, %v1172_v0  ;;  %v1133_v2 = vsel %vm354_vm14, %v1128_v50, %v1130_v1  ;;  %v1134_v3 = vsel %vm354_vm14, %v1130_v1, %v1132_v56  ;;  %3145 = vmatpush1.bf16.msra.mxu1 %v3144_v63  ;;  %v1500_v1 = vld [vmem:[%s4486_s4 + $0x88] sm:$0xff]  ;;  %vm1667_vm14 = vcmask 637952  }
 0x307   : > { %1138 = vst [vmem:[#allocation8 + $0x30] sm:$0xff] %v1133_v2  ;;  %1139 = vst [vmem:[#allocation8 + $0x38] sm:$0xff] %v1134_v3 }
 0x309   : > { %v1192_v4 = vpop.permute.xlu0 %1191  ;;  %v1150_v5 = vpop.permute.xlu1 %1149  ;;  %v1267_v34 = vld [vmem:[#allocation8 + $0x28] sm:$0xff]  ;;  %v1273_v41 = vld [vmem:[#allocation8 + $0x58] sm:$0xff] }
 0x30a   : > { %1200 = vst.msk [vmem:[#allocation8 + $0x88] sm:$0xff] %vm795_vm4, %v1192_v4  ;;  %v1153_v6 = vsel %vm382_vm12, %v1148_v53, %v1150_v5  ;;  %v1154_v7 = vsel %vm382_vm12, %v1150_v5, %v1152_v59  ;;  %v3159_v40 = vpack.c.bf16 %v1267_v34, %v1264_v38  ;;  %v3162_v43 = vpack.c.bf16 %v1273_v41, %v1270_v42  ;;  %v1501_v5 = vld [vmem:[%s4486_s4 + $0x90] sm:$0xff]  ;;  %v1492_v34 = vld [vmem:[%s4486_s4 + $0x48] sm:$0xff]  ;;  %v1511_v42 = vld [vmem:[%s4486_s4 + $0xe0] sm:$0xff] }
 0x30b   : > { %1158 = vst [vmem:[#allocation8 + $0x48] sm:$0xff] %v1153_v6  ;;  %1159 = vst [vmem:[#allocation8 + $0x50] sm:$0xff] %v1154_v7  ;;  %v3146_v8 = vpack.c.bf16 %v1154_v7, %v1134_v3  ;;  %v3148_v9 = vpack.c.bf16 %v1153_v6, %v1133_v2  ;;  %v1483_v2 = vld [vmem:[%s4486_s4] sm:$0xff]  ;;  %v1502_v6 = vld [vmem:[%s4486_s4 + $0x98] sm:$0xff] }
 0x30c   : > { %v1493_v38 = vld [vmem:[%s4486_s4 + $0x50] sm:$0xff] }
 0x30d   : > { %v1212_v10 = vpop.permute.xlu0 %1211  ;;  %v1170_v11 = vpop.permute.xlu1 %1169  ;;  %3147 = vmatprep.subr.bf16.mxu1 %v3146_v8  ;;  %v1276_v45 = vld [vmem:[#allocation8 + $0x70] sm:$0xff]  ;;  %v3174_v8 = vpack.c.bf16 %v1502_v6, %v1501_v5 }
 0x30e   : > { %1220 = vst.msk [vmem:[#allocation8 + $0xa0] sm:$0xff] %vm795_vm4, %v1212_v10  ;;  %v1173_v12 = vsel %vm404_vm7, %v1168_v52, %v1170_v11  ;;  %v1174_v13 = vsel %vm404_vm7, %v1170_v11, %v1172_v0  ;;  %3149 = vmatpush1.bf16.msra.mxu1 %v3148_v9  ;;  %vm1295_vm7 = vcmask 588800   ;;  %v1499_v0 = vld [vmem:[%s4486_s4 + $0x80] sm:$0xff]  ;;  %v1485_v9 = vld [vmem:[%s4486_s4 + $0x10] sm:$0xff] }
 0x30f   : > { %1178 = vst [vmem:[#allocation8 + $0x60] sm:$0xff] %v1173_v12  ;;  %v3170_v3 = vpack.c.bf16 %v1500_v1, %v1499_v0  ;;  %v1503_v11 = vld [vmem:[%s4486_s4 + $0xa0] sm:$0xff] }
 0x311   : > { %v1232_v14 = vpop.permute.xlu0 %1231  ;;  %v1190_v15 = vpop.permute.xlu1 %1189  ;;  %v1279_v44 = vld [vmem:[#allocation8 + $0x88] sm:$0xff]  ;;  %3171 = vmatprep.subr.bf16.mxu0 %v3170_v3 }
 0x312   : > { %1240 = vst.msk [vmem:[#allocation8 + $0xb8] sm:$0xff] %vm795_vm4, %v1232_v14  ;;  %v1193_v16 = vsel %vm428_vm13, %v1188_v55, %v1190_v15  ;;  %v1194_v17 = vsel %vm428_vm13, %v1190_v15, %v1192_v4  ;;  %v3165_v46 = vpack.c.bf16 %v1279_v44, %v1276_v45  ;;  %v1484_v4 = vld [vmem:[%s4486_s4 + $0x8] sm:$0xff]  ;;  %v1487_v15 = vld [vmem:[%s4486_s4 + $0x20] sm:$0xff]  ;;  %vm1517_vm13 = vcmask 89088  }
 0x313   : > { %1198 = vst [vmem:[#allocation8 + $0x78] sm:$0xff] %v1193_v16  ;;  %v3150_v18 = vpack.c.bf16 %v1194_v17, %v1174_v13  ;;  %v3152_v19 = vpack.c.bf16 %v1193_v16, %v1173_v12  ;;  %v3172_v7 = vpack.c.bf16 %v1484_v4, %v1483_v2  ;;  %v1504_v12 = vld [vmem:[%s4486_s4 + $0xa8] sm:$0xff]  ;;  %v1505_v17 = vld [vmem:[%s4486_s4 + $0xb0] sm:$0xff]  ;;  %v1495_v45 = vld [vmem:[%s4486_s4 + $0x60] sm:$0xff] }
 0x314   : > { %v1488_v16 = vld [vmem:[%s4486_s4 + $0x28] sm:$0xff] }
 0x315   : > { %v1228_v20 = vpop.permute.xlu0 %1227  ;;  %v1210_v22 = vpop.permute.xlu1 %1209  ;;  %3151 = vmatprep.subr.bf16.mxu1 %v3150_v18  ;;  %v1282_v49 = vld [vmem:[#allocation8 + $0xa0] sm:$0xff]  ;;  %3173 = vmatpush3.bf16.msra.mxu0 %v3172_v7  ;;  %v1506_v18 = vld [vmem:[%s4486_s4 + $0xb8] sm:$0xff] }
 0x316   : > { %v1213_v23 = vsel %vm456_vm15, %v1208_v54, %v1210_v22  ;;  %v1214_v24 = vsel %vm456_vm15, %v1210_v22, %v1212_v10  ;;  %3153 = vmatpush1.bf16.msra.mxu1 %v3152_v19  ;;  %v1486_v10 = vld [vmem:[%s4486_s4 + $0x18] sm:$0xff]  ;;  %3175 = vmatprep.subr.bf16.mxu0 %v3174_v8  ;;  %v1515_v22 = vld [vmem:[%s4486_s4 + $0x100] sm:$0xff] }
 0x317   : > { %1218 = vst [vmem:[#allocation8 + $0x90] sm:$0xff] %v1213_v23  ;;  %v3176_v13 = vpack.c.bf16 %v1486_v10, %v1485_v9 }
 0x319   : > { %v1252_v25 = vpop.permute.xlu0 %1251  ;;  %v1230_v26 = vpop.permute.xlu1 %1229  ;;  %v1285_v47 = vld [vmem:[#allocation8 + $0xb8] sm:$0xff]  ;;  %3177 = vmatpush3.bf16.msra.mxu0 %v3176_v13 }
 0x31a   : > { %1260 = vst.msk [vmem:[#allocation8 + $0xd0] sm:$0xff] %vm795_vm4, %v1252_v25  ;;  %v1233_v27 = vsel %vm480_vm3, %v1228_v20, %v1230_v26  ;;  %v1234_v28 = vsel %vm480_vm3, %v1230_v26, %v1232_v14  ;;  %v3168_v50 = vpack.c.bf16 %v1285_v47, %v1282_v49  ;;  %v3178_v14 = vpack.c.bf16 %v1504_v12, %v1503_v11  ;;  %v1490_v26 = vld [vmem:[%s4486_s4 + $0x38] sm:$0xff] }
 0x31b   : > { %1238 = vst [vmem:[#allocation8 + $0xa8] sm:$0xff] %v1233_v27  ;;  %v3154_v29 = vpack.c.bf16 %v1234_v28, %v1214_v24  ;;  %v3156_v30 = vpack.c.bf16 %v1233_v27, %v1213_v23  ;;  %v3180_v20 = vpack.c.bf16 %v1488_v16, %v1487_v15  ;;  %v1516_v23 = vld [vmem:[%s4486_s4 + $0x108] sm:$0x7]  ;;  %v3182_v24 = vpack.c.bf16 %v1506_v18, %v1505_v17  ;;  %v1507_v28 = vld [vmem:[%s4486_s4 + $0xc0] sm:$0xff]  ;;  %v1729_v17 = vld [vmem:[%s4484_s2 + $0x18] sm:$0xff] }
 0x31c   : > { %3179 = vmatprep.subr.bf16.mxu0 %v3178_v14  ;;  %v3203_v27 = vpack.c.bf16 %v1516_v23, %v1515_v22  ;;  %v1717_v18 = vld [vmem:[%s4483_s1 + $0x20] sm:$0xff]  ;;  %vm2017_vm3 = vcmask 654336  }
 0x31d   : > { %v1250_v31 = vpop.permute.xlu1 %1249  ;;  %3155 = vmatprep.subr.bf16.mxu1 %v3154_v29  ;;  %v1508_v29 = vld [vmem:[%s4486_s4 + $0xc8] sm:$0xff]  ;;  %3181 = vmatpush3.bf16.msra.mxu0 %v3180_v20 }
 0x31e   : > { %v1254_v32 = vsel %vm501_vm5, %v1250_v31, %v1252_v25  ;;  %3157 = vmatpush1.bf16.msra.mxu1 %v3156_v30  ;;  %v1489_v25 = vld [vmem:[%s4486_s4 + $0x30] sm:$0xff]  ;;  %3183 = vmatprep.subr.bf16.mxu0 %v3182_v24 }
 0x31f   : > { %1315 = vmatprep.subr.mxu1 %v1254_v32  ;;  %v3184_v30 = vpack.c.bf16 %v1490_v26, %v1489_v25  ;;  %v1491_v32 = vld [vmem:[%s4486_s4 + $0x40] sm:$0xff] }
 0x321   : > { %v1248_v35 = vpop.permute.xlu1 %1247  ;;  %v1288_v51 = vld [vmem:[#allocation8 + $0xd0] sm:$0xff]  ;;  %3185 = vmatpush3.bf16.msra.mxu0 %v3184_v30 }
 0x322   : > { %v1253_v37 = vsel %vm501_vm5, %v1248_v35, %v1250_v31  ;;  %v3186_v31 = vpack.c.bf16 %v1508_v29, %v1507_v28  ;;  %v1509_v35 = vld [vmem:[%s4486_s4 + $0xd0] sm:$0xff]  ;;  %vm2062_vm5 = vcmask 621568  }
 0x323   : > { %1258 = vst [vmem:[#allocation8 + $0xc0] sm:$0xff] %v1253_v37  ;;  %1316 = vmatpush1.msra.mxu1 %v1253_v37  ;;  %v3190_v37 = vpack.c.bf16 %v1510_v39, %v1509_v35 }
 0x324   : > { %2768 = vmatmul.mubr.msk.f32.vlgmr.msra.gmra.mrb[6].mxu1 %vm1295_vm7, %v1261_v36  ;;  %3158 = vmatprep.subr.bf16.mxu1 %v3413_v21 }
 0x325   : > { %3160 = vmatpush3.bf16.msra.mxu1 %v3159_v40  ;;  %2949 = vmatprep.mubr.msk.f32.mxu1 %vm3419_vm2, %v3418_v48  ;;  %v1494_v40 = vld [vmem:[%s4486_s4 + $0x58] sm:$0xff] }
 0x326   : > { %3161 = vmatprep.subr.bf16.mxu1 %v3413_v21  ;;  %3187 = vmatprep.subr.bf16.mxu0 %v3186_v31  ;;  %v3192_v41 = vpack.c.bf16 %v1494_v40, %v1493_v38 }
 0x329   : > { %3163 = vmatpush3.bf16.msra.mxu1 %v3162_v43  ;;  %v1512_v43 = vld [vmem:[%s4486_s4 + $0xe8] sm:$0xff] }
 0x32a   : > { %3164 = vmatprep.subr.bf16.mxu1 %v3413_v21  ;;  %v1293_v52 = vpop.permute.xlu0 %1292  ;;  %v3194_v44 = vpack.c.bf16 %v1512_v43, %v1511_v42  ;;  %v1824_v42 = vld [vmem:[%s4487_s5 + $0x8] sm:$0xff]  ;;  %v1826_v43 = vld [vmem:[%s4487_s5 + $0x18] sm:$0xff] }
 0x32d   : > { %3166 = vmatpush3.bf16.msra.mxu1 %v3165_v46  ;;  %v1496_v46 = vld [vmem:[%s4486_s4 + $0x68] sm:$0xff] }
 0x32e   : > { %3167 = vmatprep.subr.bf16.mxu1 %v3413_v21  ;;  %v3196_v47 = vpack.c.bf16 %v1496_v46, %v1495_v45  ;;  %v1825_v45 = vld [vmem:[%s4487_s5 + $0x10] sm:$0xff] }
 0x331   : > { %3169 = vmatpush3.bf16.msra.mxu1 %v3168_v50  ;;  %v1513_v50 = vld [vmem:[%s4486_s4 + $0xf0] sm:$0xff] }
 0x332   : > { %2947 = vmatprep.subr.mxu1 %v3418_v48 }
 0x335   : > { %2948 = vmatpush3.msra.mxu1 %v1288_v51  ;;  %v1514_v51 = vld [vmem:[%s4486_s4 + $0xf8] sm:$0xff] }
 0x336   : > { %2950 = vmatmul.mubr.msk.f32.vlgmr.msra.gmra.mrb[8].mxu1 %vm1295_vm7, %v1261_v36  ;;  %3202 = vmatprep.subr.bf16.mxu1 %v3413_v21  ;;  %v3188_v36 = vpack.c.bf16 %v1492_v34, %v1491_v32 }
 0x337   : > { %2956 = vmatprep.mubr.msk.f32.mxu1 %vm3419_vm2, %v3418_v48  ;;  %3205 = vmatpush3.bf16.msk.msra.mxu1 %vm3550_vm8, %v3203_v27  ;;  %vm2216_vm8 = vcmask 1043456  }
 0x338   : > { %3189 = vmatpush3.bf16.msra.mxu0 %v3188_v36  ;;  %vm4342_vm10 = vmpackc.low %vm2216_vm8, %vm3421_vm1  ;;  %vm2629_vm1 = vcmask 64512  }
 0x339   : > { %3191 = vmatprep.subr.bf16.mxu0 %v3190_v37 }
 0x33c   : > { %3193 = vmatpush3.bf16.msra.mxu0 %v3192_v41 }
 0x33d   : > { %3195 = vmatprep.subr.bf16.mxu0 %v3194_v44  ;;  %v1823_v44 = vld [vmem:[%s4487_s5] sm:$0xff] }
 0x340   : > { %3197 = vmatpush3.bf16.msra.mxu0 %v3196_v47  ;;  %v1828_v47 = vld [vmem:[%s4487_s5 + $0x28] sm:$0xff] }
 0x3f7   : > { %v1365_v53 = vpop.f32.mrb[6].mxu1 }
 0x3f8   : > { %v3969_v54 = vadd.f32 %v1365_v53, %v1293_v52  ;;  %v1367_v55 = vpop.f32.mrb[7].mxu1  ;;  %v1497_v53 = vld [vmem:[%s4486_s4 + $0x70] sm:$0xff] }
 0x3f9   : > { %v3971_v56 = vadd.f32 %v1367_v55, %v1293_v52  ;;  %v1498_v55 = vld [vmem:[%s4486_s4 + $0x78] sm:$0xff] }
 0x3fa   : > { %v1440_v57 = vmax.f32 %v3969_v54, 0.0 }
 0x3fb   : > { %v1441_v58 = vmax.f32 %v3971_v56, 0.0 }
 0x3fd   : > { %v3380_v59 = vpack.i.bf16 %v1440_v57, %v1441_v58 }
 0x3ff   : > { %3381 = vrot.lane.b32.xlu1 %v3380_v59, %s3411_s13 }
 0x409   : > { %v1436_v60 = vpop.f32.mrb[8].mxu1 }
 0x40a   : > { %v1437_v61 = vadd.f32 %v1436_v60, %v1293_v52  ;;  %v2951_v62 = vpop.f32.mrb[9].mxu1  ;;  %v3198_v52 = vpack.c.bf16 %v1514_v51, %v1513_v50  ;;  %v3222_v50 = vpack.c.bf16 %v1826_v43, %v1824_v42  ;;  %v1718_v51 = vld [vmem:[%s4483_s1 + $0x30] sm:$0xff]  ;;  %v2195_v43 = vld [vmem:[%s4488_s6 + $0x48] sm:$0xff] }
 0x40b   : > { %v2192_v42 = vld [vmem:[%s4488_s6 + $0x30] sm:$0xff] }
 0x40c   : > { %v1442_v63 = vmax.f32 %v1437_v61, 0.0  ;;  %v3200_v61 = vpack.c.bf16 %v1498_v55, %v1497_v53  ;;  %3199 = vmatprep.subr.bf16.mxu0 %v3198_v52  ;;  %v3224_v52 = vpack.c.bf16 %v1825_v45, %v1823_v44  ;;  %v1827_v55 = vld [vmem:[%s4487_s5 + $0x20] sm:$0xff]  ;;  %v2197_v44 = vld [vmem:[%s4488_s6 + $0x58] sm:$0xff] }
 0x40e   : > { %1445 = vst.msk [vmem:[#allocation7 + $0x10] sm:$0xff] %vm795_vm4, %v1442_v63  ;;  %3201 = vmatpush3.bf16.msra.mxu0 %v3200_v61  ;;  %v1834_v61 = vld [vmem:[%s4487_s5 + $0x58] sm:$0xff] }
 0x40f   : > { %3244 = vmatprep.subr.bf16.mxu0 %v3413_v21 }
 0x415   : > { %v1448_v19 = vld [vmem:[#allocation7 + $0x10] sm:$0xff] }
 0x416   : > { %1456 = vrot.lane.b32.xlu0 %v1448_v19, %s3411_s13 }
 0x471   : > { %v3382_v49 = vpop.permute.xlu1 %3381 }
 0x472   : > { %v3384_v59 = vunpack.i.h.bf16 %v3382_v49  ;;  %v3383_v60 = vunpack.i.l.bf16 %v3382_v49  ;;  %v1830_v49 = vld [vmem:[%s4487_s5 + $0x38] sm:$0xff] }
 0x473   : > { %v3226_v53 = vpack.c.bf16 %v1830_v49, %v1828_v47  ;;  %v2194_v47 = vld [vmem:[%s4488_s6 + $0x40] sm:$0xff]  ;;  %v2196_v49 = vld [vmem:[%s4488_s6 + $0x50] sm:$0xff] }
 0x474   : > { %v1458_v62 = vsel %vm330_vm9, %v3384_v59, %v3383_v60  ;;  %v1829_v59 = vld [vmem:[%s4487_s5 + $0x30] sm:$0xff] }
 0x475   : > { %v1463_v3 = vmax.f32 %v1440_v57, %v1458_v62  ;;  %v3228_v62 = vpack.c.bf16 %v1829_v59, %v1827_v55  ;;  %v2198_v55 = vld [vmem:[%s4488_s6 + $0x60] sm:$0xff]  ;;  %v2200_v59 = vld [vmem:[%s4488_s6 + $0x70] sm:$0xff] }
 0x488   : > { %v1457_v63 = vpop.permute.xlu0 %1456 }
 0x489   : > { %v1459_v0 = vsel %vm330_vm9, %v3383_v60, %v1457_v63  ;;  %v1465_v1 = vmax.f32 %v1448_v19, %v1457_v63  ;;  %vm1664_vm9 = vcmask 818176   ;;  %v1728_v19 = vld [vmem:[%s4484_s2 + $0x10] sm:$0xff]  ;;  %v1832_v60 = vld [vmem:[%s4487_s5 + $0x48] sm:$0xff] }
 0x48a   : > { %v1464_v2 = vmax.f32 %v1441_v58, %v1459_v0  ;;  %v3230_v63 = vpack.c.bf16 %v1834_v61, %v1832_v60  ;;  %v1831_v0 = vld [vmem:[%s4487_s5 + $0x40] sm:$0xff]  ;;  %v2203_v60 = vld [vmem:[%s4488_s6 + $0x88] sm:$0xff]  ;;  %v2205_v61 = vld [vmem:[%s4488_s6 + $0x98] sm:$0xff] }
 0x48b   : > { %1473 = vrot.lane.b32.xlu0 %v1465_v1, %s3412_s14 }
 0x48c   : > { %v3385_v4 = vpack.i.bf16 %v1463_v3, %v1464_v2 }
 0x48e   : > { %3386 = vrot.lane.b32.xlu1 %v3385_v4, %s3412_s14  ;;  %s3422_s14 = smov 117  }
 0x4fd   : > { %v1474_v5 = vpop.permute.xlu0 %1473 }
 0x4fe   : > { %v1482_v6 = vmax.f32 %v1465_v1, %v1474_v5  ;;  %v1833_v1 = vld [vmem:[%s4487_s5 + $0x50] sm:$0xff] }
 0x4ff   : > { %v3232_v4 = vpack.c.bf16 %v1833_v1, %v1831_v0  ;;  %v2202_v0 = vld [vmem:[%s4488_s6 + $0x80] sm:$0xff]  ;;  %v2204_v1 = vld [vmem:[%s4488_s6 + $0x90] sm:$0xff] }
 0x500   : > { %2957 = vmatmul.mubr.msk.f32.vlgmr.msra.gmra.mrb[10].mxu1 %vm1517_vm13, %v1482_v6  ;;  %v3387_v7 = vpop.permute.xlu1 %3386  ;;  %v1835_v6 = vld [vmem:[%s4487_s5 + $0x60] sm:$0xff] }
 0x501   : > { %v3389_v8 = vunpack.i.h.bf16 %v3387_v7  ;;  %v3388_v9 = vunpack.i.l.bf16 %v3387_v7  ;;  %2977 = vmatprep.mubr.msk.f32.mxu1 %vm1295_vm7, %v1717_v18  ;;  %v1837_v7 = vld [vmem:[%s4487_s5 + $0x70] sm:$0xff] }
 0x503   : > { %v1475_v10 = vsel %vm382_vm12, %v3389_v8, %v3388_v9  ;;  %v1476_v56 = vsel %vm382_vm12, %v3388_v9, %v1474_v5  ;;  %v3236_v8 = vpack.c.bf16 %v1837_v7, %v1835_v6  ;;  %v1840_v9 = vld [vmem:[%s4487_s5 + $0x88] sm:$0xff]  ;;  %vm1933_vm12 = vcmask 130048  }
 0x504   : > { %v1480_v58 = vmax.f32 %v1463_v3, %v1475_v10  ;;  %v1481_v11 = vmax.f32 %v1464_v2, %v1476_v56  ;;  %v1836_v2 = vld [vmem:[%s4487_s5 + $0x68] sm:$0xff]  ;;  %v1838_v3 = vld [vmem:[%s4487_s5 + $0x78] sm:$0xff] }
 0x505   : > { %v3234_v5 = vpack.c.bf16 %v1838_v3, %v1836_v2  ;;  %v1842_v10 = vld [vmem:[%s4487_s5 + $0x98] sm:$0x3f]  ;;  %v3289_v2 = vpack.c.bf16 %v2204_v1, %v2202_v0  ;;  %v2208_v0 = vld [vmem:[%s4488_s6 + $0xb0] sm:$0xf] }
 0x506   : > { %1588 = vmatprep.mubr.f32.mxu0 %v1481_v11  ;;  %v3238_v56 = vpack.c.bf16 %v1842_v10, %v1840_v9  ;;  %v1841_v11 = vld [vmem:[%s4487_s5 + $0x90] sm:$0x3f] }
 0x507   : > { %1589 = vmatmul.mubr.f32.vlgmr.msra.gmra.mrb[4].mxu0 %v1480_v58  ;;  %v1839_v58 = vld [vmem:[%s4487_s5 + $0x80] sm:$0xff] }
 0x5d3   : > { %v1660_v54 = vpop.f32.mrb[10].mxu1 }
 0x5d4   : > { %v2958_v57 = vpop.f32.mrb[11].mxu1 }
 0x5da   : > { %v2877_v12 = vpop.f32.mrb[4].mxu0 }
 0x5db   : > { %v2878_v13 = vpop.f32.mrb[5].mxu0 }
 0x5dc   : > { %v2879_v14 = vadd.f32 %v2878_v13, %v2877_v12 }
 0x5de   : > { %v1661_v15 = vadd.f32 %v2879_v14, %v1660_v54  ;;  %v3241_v54 = vpack.c.bf16 %v1841_v11, %v1839_v58 }
 0x5e0   : > { %1665 = vst.msk [vmem:[#allocation4] sm:$0xff] %vm1664_vm9, %v1661_v15 }
 0x5e7   : > { %v1666_v16 = vld [vmem:[#allocation4] sm:$0xff] }
 0x5e8   : > { %1677 = vrot.lane.b32.xlu0 %v1666_v16, %s3410_s12  ;;  %1671 = vrot.lane.b32.xlu1 %v1666_v16, %s3411_s13  ;;  %1668 = vst.msk [vmem:[#allocation8] sm:$0xff] %vm1667_vm14, %v1666_v16 }
 0x5ec   : > { %1689 = vrot.lane.b32.xlu0 %v1666_v16, %s3422_s14  ;;  %1683 = vrot.lane.b32.xlu1 %v1666_v16, %s3423_s29  ;;  %s3431_s14 = smov 78   ;;  %s3432_s29 = smov 100  }
 0x5ef   : > { %v1719_v27 = vld [vmem:[#allocation8] sm:$0xff] }
 0x5f0   : > { %1701 = vrot.lane.b32.xlu0 %v1666_v16, %s3414_s15  ;;  %1695 = vrot.lane.b32.xlu1 %v1666_v16, %s3424_s30  ;;  %s3433_s30 = smov 76   ;;  %s301_s15 = scalar_lea.vmem %s4490_s8, %s4498_s28 }
 0x5f4   : > { %1713 = vrot.lane.b32.xlu0 %v1666_v16, %s3425_s9  ;;  %1707 = vrot.lane.b32.xlu1 %v1666_v16, %s3426_s10 }
 0x5f8   : > { %1737 = vperm.xlu0 %3379, %v1729_v17   ;;  %1732 = vperm.xlu1 %3390, %v1728_v19  }
 0x65a   : > { %v1678_v20 = vpop.permute.xlu0 %1677  ;;  %v1672_v22 = vpop.permute.xlu1 %1671 }
 0x65b   : > { %1680 = vst.msk [vmem:[#allocation8 + $0x30] sm:$0xff] %vm1667_vm14, %v1678_v20  ;;  %1674 = vst.msk [vmem:[#allocation8 + $0x18] sm:$0xff] %vm1667_vm14, %v1672_v22 }
 0x65e   : > { %v1690_v23 = vpop.permute.xlu0 %1689  ;;  %v1684_v24 = vpop.permute.xlu1 %1683 }
 0x65f   : > { %1692 = vst.msk [vmem:[#allocation8 + $0x60] sm:$0xff] %vm1667_vm14, %v1690_v23  ;;  %1686 = vst.msk [vmem:[#allocation8 + $0x48] sm:$0xff] %vm1667_vm14, %v1684_v24 }
 0x662   : > { %v1702_v25 = vpop.permute.xlu0 %1701  ;;  %v1696_v26 = vpop.permute.xlu1 %1695  ;;  %v1720_v28 = vld [vmem:[#allocation8 + $0x18] sm:$0xff]  ;;  %v1721_v32 = vld [vmem:[#allocation8 + $0x30] sm:$0xff] }
 0x663   : > { %1704 = vst.msk [vmem:[#allocation8 + $0x90] sm:$0xff] %vm1667_vm14, %v1702_v25  ;;  %1698 = vst.msk [vmem:[#allocation8 + $0x78] sm:$0xff] %vm1667_vm14, %v1696_v26  ;;  %v3206_v29 = vpack.c.bf16 %v1720_v28, %v1719_v27  ;;  %v2091_v28 = vld [vmem:[%s4484_s2 + $0x20] sm:$0xff] }
 0x665   : > { %3207 = vmatprep.subr.bf16.mxu1 %v3206_v29 }
 0x666   : > { %v1714_v30 = vpop.permute.xlu0 %1713  ;;  %v1708_v31 = vpop.permute.xlu1 %1707  ;;  %3209 = vmatpush3.bf16.msra.mxu1 %v3206_v29  ;;  %v1722_v34 = vld [vmem:[#allocation8 + $0x48] sm:$0xff]  ;;  %v1723_v39 = vld [vmem:[#allocation8 + $0x60] sm:$0xff] }
 0x667   : > { %1716 = vst.msk [vmem:[#allocation8 + $0xc0] sm:$0xff] %vm1667_vm14, %v1714_v30  ;;  %1710 = vst.msk [vmem:[#allocation8 + $0xa8] sm:$0xff] %vm1667_vm14, %v1708_v31  ;;  %v3210_v35 = vpack.c.bf16 %v1722_v34, %v1721_v32  ;;  %v2070_v29 = vld [vmem:[%s4483_s1 + $0x48] sm:$0xff]  ;;  %v2189_v32 = vld [vmem:[%s4488_s6 + $0x18] sm:$0xff] }
 0x668   : > { %2778 = vmatprep.mubr.msk.f32.mxu0 %vm1933_vm12, %v2070_v29  ;;  %v2092_v30 = vld [vmem:[%s4484_s2 + $0x28] sm:$0xff]  ;;  %v2186_v34 = vld [vmem:[%s4488_s6] sm:$0xff] }
 0x669   : > { %3211 = vmatprep.subr.bf16.mxu1 %v3210_v35  ;;  %v2187_v31 = vld [vmem:[%s4488_s6 + $0x8] sm:$0xff] }
 0x66a   : > { %3213 = vmatpush3.bf16.msra.mxu1 %v3210_v35  ;;  %v1724_v36 = vld [vmem:[#allocation8 + $0x78] sm:$0xff]  ;;  %v1725_v38 = vld [vmem:[#allocation8 + $0x90] sm:$0xff]  ;;  %v3271_v35 = vpack.c.bf16 %v2189_v32, %v2187_v31 }
 0x66b   : > { %v3214_v37 = vpack.c.bf16 %v1724_v36, %v1723_v39  ;;  %v2188_v39 = vld [vmem:[%s4488_s6 + $0x10] sm:$0xff]  ;;  %v2191_v36 = vld [vmem:[%s4488_s6 + $0x28] sm:$0xff] }
 0x66d   : > { %3215 = vmatprep.subr.bf16.mxu1 %v3214_v37 }
 0x66e   : > { %3217 = vmatpush3.bf16.msra.mxu1 %v3214_v37  ;;  %v1726_v40 = vld [vmem:[#allocation8 + $0xa8] sm:$0xff]  ;;  %v1727_v46 = vld [vmem:[#allocation8 + $0xc0] sm:$0xff]  ;;  %v2193_v37 = vld [vmem:[%s4488_s6 + $0x38] sm:$0xff] }
 0x66f   : > { %v3218_v41 = vpack.c.bf16 %v1726_v40, %v1725_v38  ;;  %v3273_v38 = vpack.c.bf16 %v2188_v39, %v2186_v34  ;;  %v3275_v40 = vpack.c.bf16 %v2193_v37, %v2191_v36 }
 0x671   : > { %3219 = vmatprep.subr.bf16.mxu1 %v3218_v41 }
 0x672   : > { %3221 = vmatpush3.bf16.msra.mxu1 %v3218_v41  ;;  %v2190_v41 = vld [vmem:[%s4488_s6 + $0x20] sm:$0xff] }
 0x673   : > { %2975 = vmatprep.subr.mxu1 %v1727_v46  ;;  %v3277_v45 = vpack.c.bf16 %v2192_v42, %v2190_v41 }
 0x676   : > { %2976 = vmatpush3.msra.mxu1 %v1727_v46  ;;  %v3279_v46 = vpack.c.bf16 %v2197_v44, %v2195_v43 }
 0x677   : > { %2978 = vmatmul.mubr.msk.f32.vlgmr.msra.gmra.mrb[12].mxu1 %vm1295_vm7, %v1718_v51  ;;  %3223 = vmatprep.subr.bf16.mxu1 %v3222_v50  ;;  %v1733_v57 = vpop.permute.xlu1 %1732  ;;  %v1738_v15 = vpop.permute.xlu0 %1737  ;;  %v2199_v50 = vld [vmem:[%s4488_s6 + $0x68] sm:$0xff]  ;;  %v2201_v51 = vld [vmem:[%s4488_s6 + $0x78] sm:$0xff] }
 0x678   : > { %3225 = vmatpush1.bf16.msra.mxu1 %v3224_v52  ;;  %1919 = vmatprep.mubr.f32.mxu1 %v3418_v48  ;;  %v3281_v52 = vpack.c.bf16 %v2196_v49, %v2194_v47 }
 0x679   : > { %3227 = vmatprep.subr.bf16.mxu1 %v3226_v53  ;;  %v3283_v53 = vpack.c.bf16 %v2201_v51, %v2199_v50 }
 0x67c   : > { %3229 = vmatpush1.bf16.msra.mxu1 %v3228_v62  ;;  %v3285_v62 = vpack.c.bf16 %v2200_v59, %v2198_v55  ;;  %v2072_v55 = vld [vmem:[%s4483_s1 + $0x58] sm:$0xff]  ;;  %v2071_v59 = vld [vmem:[%s4483_s1 + $0x50] sm:$0xff] }
 0x67d   : > { %3231 = vmatprep.subr.bf16.mxu1 %v3230_v63  ;;  %v3287_v63 = vpack.c.bf16 %v2205_v61, %v2203_v60  ;;  %v2207_v60 = vld [vmem:[%s4488_s6 + $0xa8] sm:$0xff]  ;;  %v2209_v61 = vld [vmem:[%s4488_s6 + $0xb8] sm:$0xf] }
 0x680   : > { %3233 = vmatpush1.bf16.msra.mxu1 %v3232_v4 }
 0x681   : > { %3235 = vmatprep.subr.bf16.mxu1 %v3234_v5 }
 0x684   : > { %3237 = vmatpush1.bf16.msra.mxu1 %v3236_v8 }
 0x685   : > { %3240 = vmatprep.subr.msk.bf16.mxu1 %vm3885_vm0, %v3238_v56 }
 0x688   : > { %3243 = vmatpush1.bf16.msk.msra.mxu1 %vm3885_vm0, %v3241_v54 }
 0x689   : > { %3272 = vmatprep.subr.bf16.mxu1 %v3271_v35 }
 0x74a   : > { %v2979_v12 = vpop.f32.mrb[12].mxu1 }
 0x74b   : > { %v1812_v13 = vpop.f32.mrb[13].mxu1  ;;  %v1818_v16 = vadd.f32 %v2979_v12, %v1738_v15 }
 0x74c   : > { %v1813_v14 = vadd.f32 %v1812_v13, %v1733_v57 }
 0x74d   : > { %v1822_v18 = vmax.f32 %v1818_v16, 0.0 }
 0x74e   : > { %v1821_v17 = vmax.f32 %v1813_v14, 0.0 }
 0x750   : > { %2776 = vmatmul.mubr.msk.f32.vlgmr.msra.gmra.mrb[14].mxu1 %vm1667_vm14, %v1821_v17 }
 0x751   : > { %1925 = vmatprep.mubr.f32.mxu1 %v3418_v48  ;;  %3274 = vmatpush1.bf16.msra.mxu1 %v3273_v38 }
 0x752   : > { %3276 = vmatprep.subr.bf16.mxu1 %v3275_v40 }
 0x754   : > { %2777 = vmatmul.mubr.msk.f32.gmra.mrb[16].mxu1 %vm1667_vm14, %v1822_v18 }
 0x755   : > { %2287 = vmatprep.mubr.f32.mxu1 %v3418_v48  ;;  %3278 = vmatpush1.bf16.msra.mxu1 %v3277_v45 }
 0x756   : > { %3280 = vmatprep.subr.bf16.mxu1 %v3279_v46 }
 0x759   : > { %3282 = vmatpush1.bf16.msra.mxu1 %v3281_v52 }
 0x75a   : > { %3284 = vmatprep.subr.bf16.mxu1 %v3283_v53  ;;  %v2069_v53 = vld [vmem:[%s4483_s1 + $0x40] sm:$0xff] }
 0x75d   : > { %3286 = vmatpush1.bf16.msra.mxu1 %v3285_v62  ;;  %v3291_v62 = vpack.c.bf16 %v2209_v61, %v2207_v60 }
 0x75e   : > { %3288 = vmatprep.subr.bf16.mxu1 %v3287_v63  ;;  %v2206_v63 = vld [vmem:[%s4488_s6 + $0xa0] sm:$0xff] }
 0x761   : > { %3290 = vmatpush1.bf16.msra.mxu1 %v3289_v2  ;;  %v3294_v2 = vpack.c.bf16 %v2208_v0, %v2206_v63 }
 0x762   : > { %3293 = vmatprep.subr.msk.bf16.mxu1 %vm4342_vm10, %v3291_v62 }
 0x765   : > { %3296 = vmatpush1.bf16.msk.msra.mxu1 %vm4342_vm10, %v3294_v2 }
 0x766   : > { %3324 = vmatprep.subr.bf16.mxu1 %v3413_v21 }
 0x823   : > { %v1921_v19 = vpop.f32.mrb[14].mxu1 }
 0x824   : > { %1939 = vst.msk [vmem:[#allocation8] sm:$0xff] %vm456_vm15, %v1921_v19  ;;  %v1923_v33 = vpop.f32.mrb[15].mxu1  ;;  %1945 = vrot.lane.b32.xlu1 %v1921_v19, %s3410_s12 }
 0x825   : > { %1934 = vst.msk [vmem:[#allocation5 + $0x8] sm:$0xff] %vm1933_vm12, %v1923_v33 }
 0x827   : > { %v1927_v20 = vpop.f32.mrb[16].mxu1 }
 0x828   : > { %1940 = vst.msk [vmem:[#allocation8 + $0x18] sm:$0xff] %vm456_vm15, %v1927_v20  ;;  %v1929_v22 = vpop.f32.mrb[17].mxu1  ;;  %1957 = vrot.lane.b32.xlu1 %v1921_v19, %s3427_s17 }
 0x829   : > { %1936 = vst.msk [vmem:[#allocation5 + $0x18] sm:$0xff] %vm1933_vm12, %v1929_v22 }
 0x82b   : > { %v2073_v24 = vld [vmem:[#allocation8] sm:$0xff] }
 0x82c   : > { %v2002_v23 = vld [vmem:[#allocation5 + $0x8] sm:$0xff]  ;;  %1969 = vrot.lane.b32.xlu1 %v1921_v19, %s3428_s18 }
 0x82d   : > { %2011 = vrot.lane.b32.xlu0 %v2002_v23, %s3429_s25 }
 0x82f   : > { %v2074_v25 = vld [vmem:[#allocation8 + $0x18] sm:$0xff] }
 0x830   : > { %1981 = vrot.lane.b32.xlu1 %v1921_v19, %s3430_s26  ;;  %v3245_v26 = vpack.c.bf16 %v2074_v25, %v2073_v24  ;;  %v2004_v27 = vld [vmem:[#allocation5 + $0x18] sm:$0xff] }
 0x831   : > { %2034 = vrot.lane.b32.xlu0 %v2002_v23, %s3431_s14 }
 0x832   : > { %3246 = vmatpush1.bf16.msra.mxu0 %v3245_v26 }
 0x833   : > { %3247 = vmatprep.subr.bf16.mxu0 %v3413_v21 }
 0x834   : > { %1993 = vrot.lane.b32.xlu1 %v1921_v19, %s3432_s29 }
 0x835   : > { %2056 = vrot.lane.b32.xlu0 %v2002_v23, %s3433_s30 }
 0x838   : > { %2009 = vrot.lane.b32.xlu1 %v1921_v19, %s3429_s25 }
 0x839   : > { %1947 = vrot.lane.b32.xlu0 %v1927_v20, %s3410_s12 }
 0x83c   : > { %2032 = vrot.lane.b32.xlu1 %v1921_v19, %s3431_s14 }
 0x83d   : > { %1959 = vrot.lane.b32.xlu0 %v1927_v20, %s3427_s17 }
 0x840   : > { %2054 = vrot.lane.b32.xlu1 %v1921_v19, %s3433_s30 }
 0x841   : > { %1971 = vrot.lane.b32.xlu0 %v1927_v20, %s3428_s18 }
 0x844   : > { %2013 = vrot.lane.b32.xlu1 %v1927_v20, %s3429_s25 }
 0x845   : > { %1983 = vrot.lane.b32.xlu0 %v1927_v20, %s3430_s26 }
 0x848   : > { %2036 = vrot.lane.b32.xlu1 %v1927_v20, %s3431_s14 }
 0x849   : > { %1995 = vrot.lane.b32.xlu0 %v1927_v20, %s3432_s29 }
 0x84c   : > { %2058 = vrot.lane.b32.xlu1 %v1927_v20, %s3433_s30 }
 0x84d   : > { %2015 = vrot.lane.b32.xlu0 %v2004_v27, %s3429_s25 }
 0x850   : > { %2095 = vperm.xlu1 %3390, %v2091_v28  }
 0x851   : > { %2038 = vrot.lane.b32.xlu0 %v2004_v27, %s3431_s14 }
 0x855   : > { %2060 = vrot.lane.b32.xlu0 %v2004_v27, %s3433_s30 }
 0x859   : > { %2100 = vperm.xlu0 %3379, %v2092_v30  }
 0x896   : > { %v1946_v3 = vpop.permute.xlu1 %1945 }
 0x897   : > { %1951 = vst.msk [vmem:[#allocation8 + $0x30] sm:$0xff] %vm456_vm15, %v1946_v3 }
 0x89a   : > { %v1958_v4 = vpop.permute.xlu1 %1957 }
 0x89b   : > { %1963 = vst.msk [vmem:[#allocation8 + $0x60] sm:$0xff] %vm456_vm15, %v1958_v4 }
 0x89e   : > { %v1970_v5 = vpop.permute.xlu1 %1969  ;;  %v2075_v15 = vld [vmem:[#allocation8 + $0x30] sm:$0xff] }
 0x89f   : > { %v2012_v6 = vpop.permute.xlu0 %2011  ;;  %1975 = vst.msk [vmem:[#allocation8 + $0x90] sm:$0xff] %vm456_vm15, %v1970_v5 }
 0x8a2   : > { %v1982_v7 = vpop.permute.xlu1 %1981  ;;  %v2077_v33 = vld [vmem:[#allocation8 + $0x60] sm:$0xff] }
 0x8a3   : > { %v2035_v8 = vpop.permute.xlu0 %2034  ;;  %1987 = vst.msk [vmem:[#allocation8 + $0xc0] sm:$0xff] %vm456_vm15, %v1982_v7 }
 0x8a6   : > { %v1994_v9 = vpop.permute.xlu1 %1993  ;;  %v2079_v25 = vld [vmem:[#allocation8 + $0x90] sm:$0xff] }
 0x8a7   : > { %v2057_v10 = vpop.permute.xlu0 %2056  ;;  %1999 = vst.msk [vmem:[#allocation8 + $0xf0] sm:$0xff] %vm456_vm15, %v1994_v9 }
 0x8aa   : > { %v2010_v56 = vpop.permute.xlu1 %2009  ;;  %v2081_v29 = vld [vmem:[#allocation8 + $0xc0] sm:$0xff] }
 0x8ab   : > { %v1948_v58 = vpop.permute.xlu0 %1947  ;;  %v2018_v11 = vsel %vm2017_vm3, %v2010_v56, %v2012_v6 }
 0x8ac   : > { %1952 = vst.msk [vmem:[#allocation8 + $0x48] sm:$0xff] %vm456_vm15, %v1948_v58  ;;  %2022 = vst.msk [vmem:[#allocation8 + $0x120] sm:$0xff] %vm456_vm15, %v2018_v11 }
 0x8ae   : > { %v2033_v54 = vpop.permute.xlu1 %2032  ;;  %v2083_v39 = vld [vmem:[#allocation8 + $0xf0] sm:$0xff] }
 0x8af   : > { %v1960_v57 = vpop.permute.xlu0 %1959  ;;  %v2040_v12 = vsel %vm1667_vm14, %v2033_v54, %v2035_v8 }
 0x8b0   : > { %1964 = vst.msk [vmem:[#allocation8 + $0x78] sm:$0xff] %vm456_vm15, %v1960_v57  ;;  %2044 = vst.msk [vmem:[#allocation8 + $0x150] sm:$0xff] %vm456_vm15, %v2040_v12 }
 0x8b2   : > { %v2055_v13 = vpop.permute.xlu1 %2054 }
 0x8b3   : > { %v1972_v14 = vpop.permute.xlu0 %1971  ;;  %v2076_v16 = vld [vmem:[#allocation8 + $0x48] sm:$0xff]  ;;  %v2063_v17 = vsel %vm2062_vm5, %v2055_v13, %v2057_v10  ;;  %v2085_v43 = vld [vmem:[#allocation8 + $0x120] sm:$0xff] }
 0x8b4   : > { %1976 = vst.msk [vmem:[#allocation8 + $0xa8] sm:$0xff] %vm456_vm15, %v1972_v14  ;;  %v3248_v18 = vpack.c.bf16 %v2076_v16, %v2075_v15  ;;  %2067 = vst.msk [vmem:[#allocation8 + $0x180] sm:$0xff] %vm456_vm15, %v2063_v17 }
 0x8b6   : > { %3249 = vmatpush1.bf16.msra.mxu0 %v3248_v18  ;;  %v2014_v24 = vpop.permute.xlu1 %2013  ;;  %v2454_v18 = vld [vmem:[%s4484_s2 + $0x30] sm:$0xff] }
 0x8b7   : > { %v1984_v19 = vpop.permute.xlu0 %1983  ;;  %3250 = vmatprep.subr.bf16.mxu0 %v3413_v21  ;;  %v2078_v20 = vld [vmem:[#allocation8 + $0x78] sm:$0xff]  ;;  %v2087_v46 = vld [vmem:[#allocation8 + $0x150] sm:$0xff] }
 0x8b8   : > { %1988 = vst.msk [vmem:[#allocation8 + $0xd8] sm:$0xff] %vm456_vm15, %v1984_v19  ;;  %v3251_v22 = vpack.c.bf16 %v2078_v20, %v2077_v33  ;;  %v2435_v19 = vld [vmem:[%s4483_s1 + $0x68] sm:$0xff]  ;;  %v2623_v33 = vld [vmem:[%s4484_s2 + $0x38] sm:$0x1]  ;;  %v2534_v20 = vld [vmem:[%s4489_s7] sm:$0xff] }
 0x8ba   : > { %3252 = vmatpush1.bf16.msra.mxu0 %v3251_v22  ;;  %v2037_v34 = vpop.permute.xlu1 %2036  ;;  %v2535_v22 = vld [vmem:[%s4489_s7 + $0x8] sm:$0xff] }
 0x8bb   : > { %v1996_v23 = vpop.permute.xlu0 %1995  ;;  %3253 = vmatprep.subr.bf16.mxu0 %v3413_v21  ;;  %v2080_v26 = vld [vmem:[#allocation8 + $0xa8] sm:$0xff]  ;;  %v2089_v50 = vld [vmem:[#allocation8 + $0x180] sm:$0xff] }
 0x8bc   : > { %2000 = vst.msk [vmem:[#allocation8 + $0x108] sm:$0xff] %vm456_vm15, %v1996_v23  ;;  %v3254_v27 = vpack.c.bf16 %v2080_v26, %v2079_v25  ;;  %v2536_v23 = vld [vmem:[%s4489_s7 + $0x10] sm:$0xff]  ;;  %v2537_v25 = vld [vmem:[%s4489_s7 + $0x18] sm:$0xff] }
 0x8bd   : > { %v3328_v26 = vpack.c.bf16 %v2537_v25, %v2536_v23 }
 0x8be   : > { %3255 = vmatpush1.bf16.msra.mxu0 %v3254_v27  ;;  %v2059_v40 = vpop.permute.xlu1 %2058  ;;  %v2538_v27 = vld [vmem:[%s4489_s7 + $0x20] sm:$0xff] }
 0x8bf   : > { %v2016_v28 = vpop.permute.xlu0 %2015  ;;  %3256 = vmatprep.subr.bf16.mxu0 %v3413_v21  ;;  %v2082_v30 = vld [vmem:[#allocation8 + $0xd8] sm:$0xff] }
 0x8c0   : > { %v2019_v31 = vsel %vm2017_vm3, %v2014_v24, %v2016_v28  ;;  %v3257_v32 = vpack.c.bf16 %v2082_v30, %v2081_v29  ;;  %v3325_v24 = vpack.c.bf16 %v2535_v22, %v2534_v20  ;;  %v2539_v28 = vld [vmem:[%s4489_s7 + $0x28] sm:$0xff]  ;;  %v2540_v30 = vld [vmem:[%s4489_s7 + $0x30] sm:$0xff] }
 0x8c1   : > { %2023 = vst.msk [vmem:[#allocation8 + $0x138] sm:$0xff] %vm456_vm15, %v2019_v31  ;;  %v3331_v29 = vpack.c.bf16 %v2539_v28, %v2538_v27  ;;  %v2541_v31 = vld [vmem:[%s4489_s7 + $0x38] sm:$0xff]  ;;  %v2434_v27 = vld [vmem:[%s4483_s1 + $0x60] sm:$0xff]  ;;  %v2544_v28 = vld [vmem:[%s4489_s7 + $0x50] sm:$0xff] }
 0x8c2   : > { %3258 = vmatpush1.bf16.msra.mxu0 %v3257_v32  ;;  %v3334_v32 = vpack.c.bf16 %v2541_v31, %v2540_v30 }
 0x8c3   : > { %v2039_v35 = vpop.permute.xlu0 %2038  ;;  %3259 = vmatprep.subr.bf16.mxu0 %v3413_v21  ;;  %v2084_v36 = vld [vmem:[#allocation8 + $0x108] sm:$0xff] }
 0x8c4   : > { %v2041_v37 = vsel %vm1667_vm14, %v2037_v34, %v2039_v35  ;;  %v3260_v38 = vpack.c.bf16 %v2084_v36, %v2083_v39  ;;  %v2542_v34 = vld [vmem:[%s4489_s7 + $0x40] sm:$0xff]  ;;  %v2543_v35 = vld [vmem:[%s4489_s7 + $0x48] sm:$0xff] }
 0x8c5   : > { %2045 = vst.msk [vmem:[#allocation8 + $0x168] sm:$0xff] %vm456_vm15, %v2041_v37  ;;  %v3337_v39 = vpack.c.bf16 %v2543_v35, %v2542_v34 }
 0x8c6   : > { %3261 = vmatpush1.bf16.msra.mxu0 %v3260_v38 }
 0x8c7   : > { %v2061_v41 = vpop.permute.xlu0 %2060  ;;  %3262 = vmatprep.subr.bf16.mxu0 %v3413_v21 }
 0x8c8   : > { %v2064_v42 = vsel %vm2062_vm5, %v2059_v40, %v2061_v41  ;;  %v2086_v44 = vld [vmem:[#allocation8 + $0x138] sm:$0xff] }
 0x8c9   : > { %2068 = vst.msk [vmem:[#allocation8 + $0x198] sm:$0xff] %vm456_vm15, %v2064_v42  ;;  %v3263_v45 = vpack.c.bf16 %v2086_v44, %v2085_v43 }
 0x8cb   : > { %3264 = vmatpush1.bf16.msra.mxu0 %v3263_v45 }
 0x8cc   : > { %3265 = vmatprep.subr.bf16.mxu0 %v3413_v21  ;;  %v2088_v47 = vld [vmem:[#allocation8 + $0x168] sm:$0xff] }
 0x8cd   : > { %v3266_v49 = vpack.c.bf16 %v2088_v47, %v2087_v46 }
 0x8cf   : > { %3267 = vmatpush1.bf16.msra.mxu0 %v3266_v49  ;;  %v2096_v3 = vpop.permute.xlu1 %2095 }
 0x8d0   : > { %3268 = vmatprep.subr.bf16.mxu0 %v3413_v21  ;;  %v2090_v51 = vld [vmem:[#allocation8 + $0x198] sm:$0xff] }
 0x8d1   : > { %v3269_v52 = vpack.c.bf16 %v2090_v51, %v2089_v50 }
 0x8d3   : > { %3270 = vmatpush1.bf16.msra.mxu0 %v3269_v52 }
 0x8d4   : > { %3297 = vmatprep.subr.bf16.mxu0 %v3413_v21 }
 0x8d6   : > { %2174 = vmatmul.mubr.f32.vlgmr.msra.gmra.mrb[6].mxu0 %v2069_v53 }
 0x8d7   : > { %2779 = vmatprep.mubr.msk.f32.mxu0 %vm1933_vm12, %v2072_v55 }
 0x8d8   : > { %v2101_v8 = vpop.permute.xlu0 %2100 }
 0x8da   : > { %2179 = vmatmul.mubr.f32.gmra.mrb[8].mxu0 %v2071_v59 }
 0x8db   : > { %2784 = vmatprep.mubr.msk.f32.mxu0 %vm1933_vm12, %v2435_v19 }
 0x9a9   : > { %v2175_v4 = vpop.f32.mrb[6].mxu0 }
 0x9aa   : > { %v2176_v5 = vadd.f32 %v2175_v4, %v2096_v3  ;;  %v2177_v6 = vpop.f32.mrb[7].mxu0 }
 0x9ac   : > { %v2184_v7 = vmax.f32 %v2176_v5, 0.0 }
 0x9ad   : > { %v2180_v9 = vpop.f32.mrb[8].mxu0 }
 0x9ae   : > { %v2181_v10 = vadd.f32 %v2180_v9, %v2101_v8  ;;  %2782 = vmatmul.mubr.msk.f32.vlgmr.msra.gmra.mrb[18].mxu1 %vm456_vm15, %v2184_v7  ;;  %v2182_v56 = vpop.f32.mrb[9].mxu0 }
 0x9af   : > { %2293 = vmatprep.mubr.f32.mxu1 %v3418_v48  ;;  %3326 = vmatpush3.bf16.msra.mxu1 %v3325_v24 }
 0x9b0   : > { %v2185_v58 = vmax.f32 %v2181_v10, 0.0  ;;  %3327 = vmatprep.subr.bf16.mxu1 %v3413_v21 }
 0x9b2   : > { %2783 = vmatmul.mubr.msk.f32.gmra.mrb[20].mxu1 %vm456_vm15, %v2185_v58 }
 0x9b3   : > { %3004 = vmatprep.mubr.msk.f32.mxu1 %vm3419_vm2, %v3418_v48  ;;  %3329 = vmatpush3.bf16.msra.mxu1 %v3328_v26 }
 0x9b4   : > { %3330 = vmatprep.subr.bf16.mxu1 %v3413_v21 }
 0x9b7   : > { %3332 = vmatpush3.bf16.msra.mxu1 %v3331_v29  ;;  %v2545_v29 = vld [vmem:[%s4489_s7 + $0x58] sm:$0xf] }
 0x9b8   : > { %3333 = vmatprep.subr.bf16.mxu1 %v3413_v21  ;;  %v3340_v30 = vpack.c.bf16 %v2545_v29, %v2544_v28 }
 0x9bb   : > { %3335 = vmatpush3.bf16.msra.mxu1 %v3334_v32 }
 0x9bc   : > { %3336 = vmatprep.subr.bf16.mxu1 %v3413_v21 }
 0x9bf   : > { %3338 = vmatpush3.bf16.msra.mxu1 %v3337_v39  ;;  %v2622_v39 = vld [vmem:[%s4483_s1 + $0x70] ss:$0 sm:$0xff] }
 0x9c0   : > { %3339 = vmatprep.subr.bf16.mxu1 %v3413_v21 }
 0x9c3   : > { %3342 = vmatpush3.bf16.msk.msra.mxu1 %vm4342_vm10, %v3340_v30 }
 0x9c4   : > { %3007 = vmatprep.subr.mxu1 %v3418_v48 }
 0xa81   : > { %v2289_v11 = vpop.f32.mrb[18].mxu1 }
 0xa82   : > { %2306 = vst.msk [vmem:[#allocation8] sm:$0xff] %vm456_vm15, %v2289_v11  ;;  %v2291_v54 = vpop.f32.mrb[19].mxu1  ;;  %2312 = vrot.lane.b32.xlu1 %v2289_v11, %s3410_s12 }
 0xa83   : > { %2301 = vst.msk [vmem:[#allocation6 + $0x8] sm:$0xff] %vm1933_vm12, %v2291_v54 }
 0xa85   : > { %v2295_v57 = vpop.f32.mrb[20].mxu1 }
 0xa86   : > { %2307 = vst.msk [vmem:[#allocation8 + $0x18] sm:$0xff] %vm456_vm15, %v2295_v57  ;;  %v2297_v12 = vpop.f32.mrb[21].mxu1  ;;  %2324 = vrot.lane.b32.xlu1 %v2289_v11, %s3427_s17 }
 0xa87   : > { %2303 = vst.msk [vmem:[#allocation6 + $0x18] sm:$0xff] %vm1933_vm12, %v2297_v12 }
 0xa89   : > { %v2436_v14 = vld [vmem:[#allocation8] sm:$0xff] }
 0xa8a   : > { %v2369_v13 = vld [vmem:[#allocation6 + $0x8] sm:$0xff]  ;;  %2336 = vrot.lane.b32.xlu1 %v2289_v11, %s3428_s18 }
 0xa8b   : > { %2378 = vrot.lane.b32.xlu0 %v2369_v13, %s3429_s25 }
 0xa8d   : > { %v2437_v15 = vld [vmem:[#allocation8 + $0x18] sm:$0xff] }
 0xa8e   : > { %2348 = vrot.lane.b32.xlu1 %v2289_v11, %s3430_s26  ;;  %v3298_v16 = vpack.c.bf16 %v2437_v15, %v2436_v14  ;;  %v2371_v17 = vld [vmem:[#allocation6 + $0x18] sm:$0xff] }
 0xa8f   : > { %2400 = vrot.lane.b32.xlu0 %v2369_v13, %s3431_s14 }
 0xa90   : > { %3299 = vmatpush1.bf16.msra.mxu0 %v3298_v16 }
 0xa91   : > { %3300 = vmatprep.subr.bf16.mxu0 %v3413_v21 }
 0xa92   : > { %2360 = vrot.lane.b32.xlu1 %v2289_v11, %s3432_s29 }
 0xa93   : > { %2422 = vrot.lane.b32.xlu0 %v2369_v13, %s3433_s30 }
 0xa96   : > { %2376 = vrot.lane.b32.xlu1 %v2289_v11, %s3429_s25 }
 0xa97   : > { %2314 = vrot.lane.b32.xlu0 %v2295_v57, %s3410_s12 }
 0xa9a   : > { %2398 = vrot.lane.b32.xlu1 %v2289_v11, %s3431_s14 }
 0xa9b   : > { %2326 = vrot.lane.b32.xlu0 %v2295_v57, %s3427_s17 }
 0xa9e   : > { %2420 = vrot.lane.b32.xlu1 %v2289_v11, %s3433_s30 }
 0xa9f   : > { %2338 = vrot.lane.b32.xlu0 %v2295_v57, %s3428_s18 }
 0xaa2   : > { %2380 = vrot.lane.b32.xlu1 %v2295_v57, %s3429_s25 }
 0xaa3   : > { %2350 = vrot.lane.b32.xlu0 %v2295_v57, %s3430_s26 }
 0xaa6   : > { %2402 = vrot.lane.b32.xlu1 %v2295_v57, %s3431_s14 }
 0xaa7   : > { %2362 = vrot.lane.b32.xlu0 %v2295_v57, %s3432_s29 }
 0xaaa   : > { %2424 = vrot.lane.b32.xlu1 %v2295_v57, %s3433_s30 }
 0xaab   : > { %2382 = vrot.lane.b32.xlu0 %v2371_v17, %s3429_s25 }
 0xaae   : > { %2457 = vperm.xlu1 %3390, %v2454_v18  }
 0xaaf   : > { %2404 = vrot.lane.b32.xlu0 %v2371_v17, %s3431_s14 }
 0xab3   : > { %2426 = vrot.lane.b32.xlu0 %v2371_v17, %s3433_s30 }
 0xab7   : > { %2626 = vperm.xlu0 %3379, %v2623_v33  }
 0xaf4   : > { %v2313_v36 = vpop.permute.xlu1 %2312 }
 0xaf5   : > { %2318 = vst.msk [vmem:[#allocation8 + $0x30] sm:$0xff] %vm456_vm15, %v2313_v36 }
 0xaf8   : > { %v2325_v37 = vpop.permute.xlu1 %2324 }
 0xaf9   : > { %2330 = vst.msk [vmem:[#allocation8 + $0x60] sm:$0xff] %vm456_vm15, %v2325_v37 }
 0xafc   : > { %v2337_v38 = vpop.permute.xlu1 %2336  ;;  %v2438_v55 = vld [vmem:[#allocation8 + $0x30] sm:$0xff] }
 0xafd   : > { %v2379_v40 = vpop.permute.xlu0 %2378  ;;  %2342 = vst.msk [vmem:[#allocation8 + $0x90] sm:$0xff] %vm456_vm15, %v2337_v38 }
 0xb00   : > { %v2349_v41 = vpop.permute.xlu1 %2348  ;;  %v2440_v63 = vld [vmem:[#allocation8 + $0x60] sm:$0xff] }
 0xb01   : > { %v2401_v42 = vpop.permute.xlu0 %2400  ;;  %2354 = vst.msk [vmem:[#allocation8 + $0xc0] sm:$0xff] %vm456_vm15, %v2349_v41 }
 0xb04   : > { %v2361_v43 = vpop.permute.xlu1 %2360  ;;  %v2442_v5 = vld [vmem:[#allocation8 + $0x90] sm:$0xff] }
 0xb05   : > { %v2423_v44 = vpop.permute.xlu0 %2422  ;;  %2366 = vst.msk [vmem:[#allocation8 + $0xf0] sm:$0xff] %vm456_vm15, %v2361_v43 }
 0xb08   : > { %v2377_v45 = vpop.permute.xlu1 %2376  ;;  %v2444_v9 = vld [vmem:[#allocation8 + $0xc0] sm:$0xff] }
 0xb09   : > { %v2315_v46 = vpop.permute.xlu0 %2314  ;;  %v2384_v47 = vsel %vm2017_vm3, %v2377_v45, %v2379_v40 }
 0xb0a   : > { %2319 = vst.msk [vmem:[#allocation8 + $0x48] sm:$0xff] %vm456_vm15, %v2315_v46  ;;  %2388 = vst.msk [vmem:[#allocation8 + $0x120] sm:$0xff] %vm456_vm15, %v2384_v47 }
 0xb0c   : > { %v2399_v49 = vpop.permute.xlu1 %2398  ;;  %v2446_v57 = vld [vmem:[#allocation8 + $0xf0] sm:$0xff] }
 0xb0d   : > { %v2327_v50 = vpop.permute.xlu0 %2326  ;;  %v2406_v51 = vsel %vm1667_vm14, %v2399_v49, %v2401_v42 }
 0xb0e   : > { %2331 = vst.msk [vmem:[#allocation8 + $0x78] sm:$0xff] %vm456_vm15, %v2327_v50  ;;  %2410 = vst.msk [vmem:[#allocation8 + $0x150] sm:$0xff] %vm456_vm15, %v2406_v51 }
 0xb10   : > { %v2421_v52 = vpop.permute.xlu1 %2420 }
 0xb11   : > { %v2339_v53 = vpop.permute.xlu0 %2338  ;;  %v2439_v59 = vld [vmem:[#allocation8 + $0x48] sm:$0xff]  ;;  %v2428_v60 = vsel %vm2062_vm5, %v2421_v52, %v2423_v44  ;;  %v2448_v18 = vld [vmem:[#allocation8 + $0x120] sm:$0xff] }
 0xb12   : > { %2343 = vst.msk [vmem:[#allocation8 + $0xa8] sm:$0xff] %vm456_vm15, %v2339_v53  ;;  %v3301_v61 = vpack.c.bf16 %v2439_v59, %v2438_v55  ;;  %2432 = vst.msk [vmem:[#allocation8 + $0x180] sm:$0xff] %vm456_vm15, %v2428_v60 }
 0xb14   : > { %3302 = vmatpush1.bf16.msra.mxu0 %v3301_v61  ;;  %v2381_v4 = vpop.permute.xlu1 %2380 }
 0xb15   : > { %v2351_v62 = vpop.permute.xlu0 %2350  ;;  %3303 = vmatprep.subr.bf16.mxu0 %v3413_v21  ;;  %v2441_v0 = vld [vmem:[#allocation8 + $0x78] sm:$0xff]  ;;  %v2450_v20 = vld [vmem:[#allocation8 + $0x150] sm:$0xff] }
 0xb16   : > { %2355 = vst.msk [vmem:[#allocation8 + $0xd8] sm:$0xff] %vm456_vm15, %v2351_v62  ;;  %v3304_v2 = vpack.c.bf16 %v2441_v0, %v2440_v63 }
 0xb18   : > { %3305 = vmatpush1.bf16.msra.mxu0 %v3304_v2  ;;  %v2403_v11 = vpop.permute.xlu1 %2402 }
 0xb19   : > { %v2363_v3 = vpop.permute.xlu0 %2362  ;;  %3306 = vmatprep.subr.bf16.mxu0 %v3413_v21  ;;  %v2443_v6 = vld [vmem:[#allocation8 + $0xa8] sm:$0xff]  ;;  %v2452_v24 = vld [vmem:[#allocation8 + $0x180] sm:$0xff] }
 0xb1a   : > { %2367 = vst.msk [vmem:[#allocation8 + $0x108] sm:$0xff] %vm456_vm15, %v2363_v3  ;;  %v3307_v7 = vpack.c.bf16 %v2443_v6, %v2442_v5 }
 0xb1c   : > { %3308 = vmatpush1.bf16.msra.mxu0 %v3307_v7  ;;  %v2425_v15 = vpop.permute.xlu1 %2424 }
 0xb1d   : > { %v2383_v8 = vpop.permute.xlu0 %2382  ;;  %3309 = vmatprep.subr.bf16.mxu0 %v3413_v21  ;;  %v2445_v10 = vld [vmem:[#allocation8 + $0xd8] sm:$0xff] }
 0xb1e   : > { %v2385_v56 = vsel %vm2017_vm3, %v2381_v4, %v2383_v8  ;;  %v3310_v58 = vpack.c.bf16 %v2445_v10, %v2444_v9 }
 0xb1f   : > { %2389 = vst.msk [vmem:[#allocation8 + $0x138] sm:$0xff] %vm456_vm15, %v2385_v56 }
 0xb20   : > { %3311 = vmatpush1.bf16.msra.mxu0 %v3310_v58 }
 0xb21   : > { %v2405_v54 = vpop.permute.xlu0 %2404  ;;  %3312 = vmatprep.subr.bf16.mxu0 %v3413_v21  ;;  %v2447_v12 = vld [vmem:[#allocation8 + $0x108] sm:$0xff] }
 0xb22   : > { %v2407_v13 = vsel %vm1667_vm14, %v2403_v11, %v2405_v54  ;;  %v3313_v14 = vpack.c.bf16 %v2447_v12, %v2446_v57 }
 0xb23   : > { %2411 = vst.msk [vmem:[#allocation8 + $0x168] sm:$0xff] %vm456_vm15, %v2407_v13 }
 0xb24   : > { %3314 = vmatpush1.bf16.msra.mxu0 %v3313_v14 }
 0xb25   : > { %v2427_v16 = vpop.permute.xlu0 %2426  ;;  %3315 = vmatprep.subr.bf16.mxu0 %v3413_v21 }
 0xb26   : > { %v2429_v17 = vsel %vm2062_vm5, %v2425_v15, %v2427_v16  ;;  %v2449_v19 = vld [vmem:[#allocation8 + $0x138] sm:$0xff] }
 0xb27   : > { %2433 = vst.msk [vmem:[#allocation8 + $0x198] sm:$0xff] %vm456_vm15, %v2429_v17  ;;  %v3316_v33 = vpack.c.bf16 %v2449_v19, %v2448_v18 }
 0xb29   : > { %3317 = vmatpush1.bf16.msra.mxu0 %v3316_v33 }
 0xb2a   : > { %3318 = vmatprep.subr.bf16.mxu0 %v3413_v21  ;;  %v2451_v22 = vld [vmem:[#allocation8 + $0x168] sm:$0xff] }
 0xb2b   : > { %v3319_v23 = vpack.c.bf16 %v2451_v22, %v2450_v20 }
 0xb2d   : > { %3320 = vmatpush1.bf16.msra.mxu0 %v3319_v23 }
 0xb2e   : > { %3321 = vmatprep.subr.bf16.mxu0 %v3413_v21  ;;  %v2453_v25 = vld [vmem:[#allocation8 + $0x198] sm:$0xff]  ;;  %v2458_v21 = vpop.permute.xlu1 %2457 }
 0xb2f   : > { %v3322_v26 = vpack.c.bf16 %v2453_v25, %v2452_v24 }
 0xb31   : > { %3323 = vmatpush1.bf16.msra.mxu0 %v3322_v26 }
 0xb34   : > { %2528 = vmatmul.mubr.f32.vlgmr.msra.gmra.mrb[10].mxu0 %v2434_v27 }
 0xb36   : > { %v2627_v37 = vpop.permute.xlu0 %2626 }
 0xc07   : > { %v2529_v31 = vpop.f32.mrb[10].mxu0 }
 0xc08   : > { %v2530_v32 = vadd.f32 %v2529_v31, %v2458_v21  ;;  %v2531_v34 = vpop.f32.mrb[11].mxu0 }
 0xc0a   : > { %v2533_v35 = vmax.f32 %v2530_v32, 0.0 }
 0xc0c   : > { %3005 = vmatmul.mubr.msk.f32.vlgmr.msra.gmra.mrb[22].mxu1 %vm456_vm15, %v2533_v35 }
 0xc0d   : > { %3009 = vmatprep.mubr.msk.f32.mxu1 %vm3419_vm2, %v3418_v48 }
 0xcdf   : > { %v2618_v1 = vpop.f32.mrb[22].mxu1 }
 0xce0   : > { %v3006_v36 = vpop.f32.mrb[23].mxu1  ;;  %3008 = vmatpush3.msra.mxu1 %v2618_v1 }
 0xce1   : > { %3010 = vmatmul.mubr.msk.f32.vlgmr.msra.gmra.mrb[24].mxu1 %vm2629_vm1, %v2622_v39 }
 0xdb4   : > { %v2699_v38 = vpop.f32.mrb[24].mxu1 }
 0xdb5   : > { %v2700_v40 = vadd.f32 %v2699_v38, %v2627_v37  ;;  %v3011_v41 = vpop.f32.mrb[25].mxu1 }
 0xdb7   : > { %2704 = vst.msk [vmem:[%s301_s15] sm:$0x1] %vm2703_vm11, %v2700_v40 }
 0xdb8 PF: > { %s18_s27 = sadd.s32 1, %s3407_s27  }
 0xdb9   : > { %p15_p4 = scmp.ge.s32.totalorder %s18_s27, 4  }
 0xdbb   :  { %17 = sbr.rel (!%p15_p4) target bundleno = 1 (0x1), region = 82 }

</bundles_post_ra>
